<compile_context>
chip_gen: v6e
topology: v6e:2x2x1
jax: 0.10.0
libtpu: 0.0.40
codegen_flags: <defaults>
</compile_context>

<pallas_src>
import functools

import jax
import jax.numpy as jnp
from jax.experimental import pallas as pl
from jax.experimental.pallas import tpu as pltpu


# ----------------------------------------------------------------------------
# Fused Pallas kernel: whole autoencoder forward as 6 chained matmul+bias(+ReLU)
# ----------------------------------------------------------------------------
def _fused_kernel(x_ref,
                  w1_ref, b1_ref, w2_ref, b2_ref, w3_ref, b3_ref,
                  w4_ref, b4_ref, w5_ref, b5_ref, w6_ref, b6_ref,
                  o_ref):
    def stage(a, w_ref, b_ref, relu):
        y = jnp.dot(a, w_ref[...], preferred_element_type=jnp.float32) + b_ref[...]
        return jnp.maximum(y, 0.0) if relu else y

    a = x_ref[...]                          # (tm, 4*n1)   patch-major input row
    a = stage(a, w1_ref, b1_ref, True)      # enc conv1  (block-diag)  -> (tm, c1*n1)
    a = stage(a, w2_ref, b2_ref, True)      # enc conv2  (block-diag)  -> (tm, c2*n2)
    a = stage(a, w3_ref, b3_ref, False)     # fc_enc                   -> (tm, latent)
    a = stage(a, w4_ref, b4_ref, False)     # fc_dec                   -> (tm, c2*n2)
    a = stage(a, w5_ref, b5_ref, True)      # dec convT1 (block-diag)  -> (tm, c1*n1)
    a = stage(a, w6_ref, b6_ref, False)     # dec convT2 (block-diag)  -> (tm, 4*n1)
    o_ref[...] = a.astype(o_ref.dtype)


def _choose_tm(batch):
    for tm in (512, 256, 128, 64, 32, 16, 8):
        if batch % tm == 0:
            return tm
    return batch  # small / odd batches: single M block (equals full dim -> legal)


def _fused_forward_2d(xp, fused):
    """xp: (B, 4*n1) f32 patch-major rows -> (B, 4*n1) reconstructed patch-major rows."""
    B, d_in = xp.shape
    d_out = fused["w6"].shape[1]
    assert fused["w1"].shape[0] == d_in
    tm = _choose_tm(B)
    grid = (B // tm,)

    weight_keys = ("w1", "b1", "w2", "b2", "w3", "b3", "w4", "b4", "w5", "b5", "w6", "b6")
    weight_args = [fused[k] for k in weight_keys]

    in_specs = [pl.BlockSpec((tm, d_in), lambda i: (i, 0))]
    for arr in weight_args:  # weights/biases: constant block across the grid (stay resident)
        in_specs.append(pl.BlockSpec(arr.shape, lambda i: (0, 0)))

    return pl.pallas_call(
        _fused_kernel,
        out_shape=jax.ShapeDtypeStruct((B, d_out), jnp.float32),
        grid_spec=pltpu.PrefetchScalarGridSpec(
            num_scalar_prefetch=0,
            grid=grid,
            in_specs=in_specs,
            out_specs=pl.BlockSpec((tm, d_out), lambda i: (i, 0)),
        ),
        compiler_params=pltpu.CompilerParams(
            dimension_semantics=("parallel",)),
    )(xp, *weight_args)


# ----------------------------------------------------------------------------
# One-time weight preparation (all transposes / block-diag / bias tiling hoisted here)
# ----------------------------------------------------------------------------
def prepare_fused_params(p, *, height, width, c1=8, c2=16):
    h4, w4 = height // 4, width // 4          # enc2 spatial grid (Y, X)
    n2 = h4 * w4                              # enc2 patches (= dec1 positions)
    n1 = 4 * n2                               # enc1 patches (= dec2 positions)
    latent = p["fc_enc_w"].shape[0]

    def bd(block, n):                         # block-diagonal with `block` repeated n times
        return jnp.kron(jnp.eye(n, dtype=block.dtype), block)

    f = {}
    # enc conv1 (c1, 1, 2, 2): per-patch map (pi,pj) -> c1
    w1m = p["enc1_w"].reshape(c1, 4).T                                   # (4, c1)
    f["w1"] = bd(w1m, n1)                                                # (4*n1, c1*n1)
    f["b1"] = jnp.tile(p["enc1_b"], n1)[None, :]
    # enc conv2 (c2, c1, 2, 2): per-patch map, rows ordered (ki, kj, c1)
    w2m = p["enc2_w"].transpose(2, 3, 1, 0).reshape(4 * c1, c2)          # (4*c1, c2)
    f["w2"] = bd(w2m, n2)                                                # (4*c1*n2, c2*n2)
    f["b2"] = jnp.tile(p["enc2_b"], n2)[None, :]
    # fc_enc: PyTorch flat order (c2, y, x)  ->  our column order (y, x, c2)
    f["w3"] = (p["fc_enc_w"].reshape(latent, c2, h4, w4)
               .transpose(2, 3, 1, 0).reshape(n2 * c2, latent))
    f["b3"] = p["fc_enc_b"][None, :]
    # fc_dec: output columns reordered to (y, x, c2)
    f["w4"] = (p["fc_dec_w"].reshape(c2, h4, w4, latent)
               .transpose(1, 2, 0, 3).reshape(n2 * c2, latent)).T
    f["b4"] = p["fc_dec_b"].reshape(c2, h4, w4).transpose(1, 2, 0).reshape(n2 * c2)[None, :]
    # dec convT1 (c2, c1, 2, 2): per-position map, cols ordered (ki, kj, c1)
    w5m = p["dec1_w"].transpose(0, 2, 3, 1).reshape(c2, 4 * c1)          # (c2, 4*c1)
    f["w5"] = bd(w5m, n2)                                                # (c2*n2, 4*c1*n2)
    f["b5"] = jnp.tile(p["dec1_b"], 4 * n2)[None, :]
    # dec convT2 (c1, 1, 2, 2): per-position map c1 -> (pi, pj)
    w6m = p["dec2_w"].reshape(c1, 4)                                     # (c1, 4)
    f["w6"] = bd(w6m, n1)                                                # (c1*n1, 4*n1)
    f["b6"] = jnp.tile(jnp.repeat(p["dec2_b"], 4), n1)[None, :]
    return f


# ----------------------------------------------------------------------------
# Forward: only input/output patch layout lives outside the kernel
# ----------------------------------------------------------------------------
def autoencoder_forward(x, fused, *, height, width):
    B = x.shape[0]
    h4, w4 = height // 4, width // 4
    # (B,1,H,W) -> rows of columns ordered (Y, X, ki, kj, pi, pj); pixel = (4Y+2ki+pi, 4X+2kj+pj)
    xp = (x.reshape(B, h4, 2, 2, w4, 2, 2)
           .transpose(0, 1, 4, 2, 5, 3, 6)
           .reshape(B, h4 * w4 * 16))
    y = _fused_forward_2d(xp, fused)
    # inverse un-patch back to NCHW
    x_hat = (y.reshape(B, h4, w4, 2, 2, 2, 2)
              .transpose(0, 1, 3, 5, 2, 4, 6)
              .reshape(B, 1, height, width))
    return x_hat


# ----------------------------------------------------------------------------
# Pure-JAX reference (conv-as-patches, original PyTorch param layout)
# ----------------------------------------------------------------------------
def _ref_linear(x, w, b, relu):
    y = x @ w + b
    return jnp.maximum(y, 0.0) if relu else y


def reference_forward(x, params):
    def conv(x, w, b, relu):
        n, cin, h, wd = x.shape
        cout = w.shape[0]
        h2, w2 = h // 2, wd // 2
        p = x.reshape(n, cin, h2, 2, w2, 2).transpose(0, 2, 4, 1, 3, 5).reshape(-1, cin * 4)
        y = _ref_linear(p, w.reshape(cout, -1).T, b, relu)
        return y.reshape(n, h2, w2, cout).transpose(0, 3, 1, 2)

    def convT(x, w, b, relu):
        n, cin, h, wd = x.shape
        cout = w.shape[1]
        xm = x.transpose(0, 2, 3, 1).reshape(-1, cin)
        y = _ref_linear(xm, w.reshape(cin, -1), jnp.repeat(b, 4), relu)
        return (y.reshape(n, h, wd, cout, 2, 2)
                 .transpose(0, 3, 1, 4, 2, 5)
                 .reshape(n, cout, 2 * h, 2 * wd))

    h1 = conv(x, params["enc1_w"], params["enc1_b"], True)
    z = conv(h1, params["enc2_w"], params["enc2_b"], True)
    zf = z.reshape(z.shape[0], -1)
    lat = _ref_linear(zf, params["fc_enc_w"].T, params["fc_enc_b"], False)
    zh = _ref_linear(lat, params["fc_dec_w"].T, params["fc_dec_b"], False).reshape(z.shape)
    d1 = convT(zh, params["dec1_w"], params["dec1_b"], True)
    return convT(d1, params["dec2_w"], params["dec2_b"], False)


# ----------------------------------------------------------------------------
# Deterministic parameter init (PyTorch-style uniform(+-1/sqrt(fan_in)), PyTorch layouts)
# ----------------------------------------------------------------------------
def make_params(key, *, c1=8, c2=16, latent_dim=32, flat_dim=None):
    ks = jax.random.split(key, 12)

    def u(k, shape, fan_in):
        bound = 1.0 / jnp.sqrt(jnp.float32(fan_in))
        return jax.random.uniform(k, shape, jnp.float32, -bound, bound)

    p = {}
    p["enc1_w"] = u(ks[0], (c1, 1, 2, 2), 1 * 4)
    p["enc1_b"] = u(ks[1], (c1,), 1 * 4)
    p["enc2_w"] = u(ks[2], (c2, c1, 2, 2), c1 * 4)
    p["enc2_b"] = u(ks[3], (c2,), c1 * 4)
    p["fc_enc_w"] = u(ks[4], (latent_dim, flat_dim), flat_dim)   # nn.Linear: (out, in)
    p["fc_enc_b"] = u(ks[5], (latent_dim,), flat_dim)
    p["fc_dec_w"] = u(ks[6], (flat_dim, latent_dim), latent_dim)
    p["fc_dec_b"] = u(ks[7], (flat_dim,), latent_dim)
    p["dec1_w"] = u(ks[8], (c2, c1, 2, 2), c2 * 4)               # ConvTranspose: (Cin, Cout, kh, kw)
    p["dec1_b"] = u(ks[9], (c1,), c2 * 4)
    p["dec2_w"] = u(ks[10], (c1, 1, 2, 2), c1 * 4)
    p["dec2_b"] = u(ks[11], (1,), c1 * 4)
    return p


if __name__ == "__main__":
    key = jax.random.PRNGKey(0)
    kx, kp = jax.random.split(key)

    batch, height, width = 2, 16, 16
    c1, c2, latent_dim = 8, 16, 32
    flat_dim = c2 * (height // 4) * (width // 4)   # what the module's dummy pass computes

    x = jax.random.normal(kx, (batch, 1, height, width), jnp.float32)   # NCHW
    params = make_params(kp, c1=c1, c2=c2, latent_dim=latent_dim, flat_dim=flat_dim)
    fused = prepare_fused_params(params, height=height, width=width, c1=c1, c2=c2)

    fwd = jax.jit(functools.partial(autoencoder_forward, height=height, width=width))
    x_hat = jax.block_until_ready(fwd(x, fused))
    assert x_hat.shape == x.shape, (x_hat.shape, x.shape)

    ref = reference_forward(x, params)
    err = float(jnp.max(jnp.abs(x_hat - ref)))
    assert jnp.allclose(x_hat, ref, atol=1e-3, rtol=1e-3), f"mismatch vs reference, max |err|={err}"

    print("KERNEL_OK")
</pallas_src>

<mosaic_0001>
module attributes {stable_mosaic.version = 11 : i64} {
  func.func @_fused_kernel(%arg0: i32, %arg1: memref<2x256xf32, #tpu.memory_space<vmem>>, %arg2: memref<256x512xf32, #tpu.memory_space<vmem>>, %arg3: memref<1x512xf32, #tpu.memory_space<vmem>>, %arg4: memref<512x256xf32, #tpu.memory_space<vmem>>, %arg5: memref<1x256xf32, #tpu.memory_space<vmem>>, %arg6: memref<256x32xf32, #tpu.memory_space<vmem>>, %arg7: memref<1x32xf32, #tpu.memory_space<vmem>>, %arg8: memref<32x256xf32, #tpu.memory_space<vmem>>, %arg9: memref<1x256xf32, #tpu.memory_space<vmem>>, %arg10: memref<256x512xf32, #tpu.memory_space<vmem>>, %arg11: memref<1x512xf32, #tpu.memory_space<vmem>>, %arg12: memref<512x256xf32, #tpu.memory_space<vmem>>, %arg13: memref<1x256xf32, #tpu.memory_space<vmem>>, %arg14: memref<2x256xf32, #tpu.memory_space<vmem>>) attributes {dimension_semantics = [#tpu.dimension_semantics<parallel>], iteration_bounds = array<i64: 1>, scalar_prefetch = 0 : i64, scratch_operands = 0 : i64, tpu.core_type = #tpu.core_type<tc>, window_params = [{transform_indices = @transform_0, window_bounds = array<i64: 2, 256>}, {pipeline_mode = #tpu.pipeline_mode<synchronous>, transform_indices = @transform_1, window_bounds = array<i64: 256, 512>}, {pipeline_mode = #tpu.pipeline_mode<synchronous>, transform_indices = @transform_2, window_bounds = array<i64: 1, 512>}, {pipeline_mode = #tpu.pipeline_mode<synchronous>, transform_indices = @transform_3, window_bounds = array<i64: 512, 256>}, {pipeline_mode = #tpu.pipeline_mode<synchronous>, transform_indices = @transform_4, window_bounds = array<i64: 1, 256>}, {pipeline_mode = #tpu.pipeline_mode<synchronous>, transform_indices = @transform_5, window_bounds = array<i64: 256, 32>}, {pipeline_mode = #tpu.pipeline_mode<synchronous>, transform_indices = @transform_6, window_bounds = array<i64: 1, 32>}, {pipeline_mode = #tpu.pipeline_mode<synchronous>, transform_indices = @transform_7, window_bounds = array<i64: 32, 256>}, {pipeline_mode = #tpu.pipeline_mode<synchronous>, transform_indices = @transform_8, window_bounds = array<i64: 1, 256>}, {pipeline_mode = #tpu.pipeline_mode<synchronous>, transform_indices = @transform_9, window_bounds = array<i64: 256, 512>}, {pipeline_mode = #tpu.pipeline_mode<synchronous>, transform_indices = @transform_10, window_bounds = array<i64: 1, 512>}, {pipeline_mode = #tpu.pipeline_mode<synchronous>, transform_indices = @transform_11, window_bounds = array<i64: 512, 256>}, {pipeline_mode = #tpu.pipeline_mode<synchronous>, transform_indices = @transform_12, window_bounds = array<i64: 1, 256>}, {transform_indices = @transform_13, window_bounds = array<i64: 2, 256>}]} {
    %c0 = arith.constant 0 : index
    %c0_0 = arith.constant 0 : index
    %0 = vector.load %arg1[%c0, %c0_0] : memref<2x256xf32, #tpu.memory_space<vmem>>, vector<2x256xf32>
    %c0_1 = arith.constant 0 : index
    %c0_2 = arith.constant 0 : index
    %1 = vector.load %arg2[%c0_1, %c0_2] : memref<256x512xf32, #tpu.memory_space<vmem>>, vector<256x512xf32>
    %cst = arith.constant dense<0.000000e+00> : vector<2x512xf32>
    %2 = tpu.matmul %0, %1, %cst {dimension_numbers = #tpu.dot_dimension_numbers<[1], [0], [0], [1], [0, 0, 1, 1], [], []>} : vector<2x256xf32>, vector<256x512xf32>, vector<2x512xf32> -> vector<2x512xf32>
    %c0_3 = arith.constant 0 : index
    %c0_4 = arith.constant 0 : index
    %3 = vector.load %arg3[%c0_3, %c0_4] : memref<1x512xf32, #tpu.memory_space<vmem>>, vector<1x512xf32>
    %4 = vector.broadcast %3 : vector<1x512xf32> to vector<2x512xf32>
    %5 = arith.addf %2, %4 : vector<2x512xf32>
    %cst_5 = arith.constant 0.000000e+00 : f32
    %6 = vector.broadcast %cst_5 : f32 to vector<2x512xf32>
    %7 = arith.maximumf %5, %6 : vector<2x512xf32>
    %c0_6 = arith.constant 0 : index
    %c0_7 = arith.constant 0 : index
    %8 = vector.load %arg4[%c0_6, %c0_7] : memref<512x256xf32, #tpu.memory_space<vmem>>, vector<512x256xf32>
    %cst_8 = arith.constant dense<0.000000e+00> : vector<2x256xf32>
    %9 = tpu.matmul %7, %8, %cst_8 {dimension_numbers = #tpu.dot_dimension_numbers<[1], [0], [0], [1], [0, 0, 1, 1], [], []>} : vector<2x512xf32>, vector<512x256xf32>, vector<2x256xf32> -> vector<2x256xf32>
    %c0_9 = arith.constant 0 : index
    %c0_10 = arith.constant 0 : index
    %10 = vector.load %arg5[%c0_9, %c0_10] : memref<1x256xf32, #tpu.memory_space<vmem>>, vector<1x256xf32>
    %11 = vector.broadcast %10 : vector<1x256xf32> to vector<2x256xf32>
    %12 = arith.addf %9, %11 : vector<2x256xf32>
    %cst_11 = arith.constant 0.000000e+00 : f32
    %13 = vector.broadcast %cst_11 : f32 to vector<2x256xf32>
    %14 = arith.maximumf %12, %13 : vector<2x256xf32>
    %c0_12 = arith.constant 0 : index
    %c0_13 = arith.constant 0 : index
    %15 = vector.load %arg6[%c0_12, %c0_13] : memref<256x32xf32, #tpu.memory_space<vmem>>, vector<256x32xf32>
    %cst_14 = arith.constant dense<0.000000e+00> : vector<2x32xf32>
    %16 = tpu.matmul %14, %15, %cst_14 {dimension_numbers = #tpu.dot_dimension_numbers<[1], [0], [0], [1], [0, 0, 1, 1], [], []>} : vector<2x256xf32>, vector<256x32xf32>, vector<2x32xf32> -> vector<2x32xf32>
    %c0_15 = arith.constant 0 : index
    %c0_16 = arith.constant 0 : index
    %17 = vector.load %arg7[%c0_15, %c0_16] : memref<1x32xf32, #tpu.memory_space<vmem>>, vector<1x32xf32>
    %18 = vector.broadcast %17 : vector<1x32xf32> to vector<2x32xf32>
    %19 = arith.addf %16, %18 : vector<2x32xf32>
    %c0_17 = arith.constant 0 : index
    %c0_18 = arith.constant 0 : index
    %20 = vector.load %arg8[%c0_17, %c0_18] : memref<32x256xf32, #tpu.memory_space<vmem>>, vector<32x256xf32>
    %cst_19 = arith.constant dense<0.000000e+00> : vector<2x256xf32>
    %21 = tpu.matmul %19, %20, %cst_19 {dimension_numbers = #tpu.dot_dimension_numbers<[1], [0], [0], [1], [0, 0, 1, 1], [], []>} : vector<2x32xf32>, vector<32x256xf32>, vector<2x256xf32> -> vector<2x256xf32>
    %c0_20 = arith.constant 0 : index
    %c0_21 = arith.constant 0 : index
    %22 = vector.load %arg9[%c0_20, %c0_21] : memref<1x256xf32, #tpu.memory_space<vmem>>, vector<1x256xf32>
    %23 = vector.broadcast %22 : vector<1x256xf32> to vector<2x256xf32>
    %24 = arith.addf %21, %23 : vector<2x256xf32>
    %c0_22 = arith.constant 0 : index
    %c0_23 = arith.constant 0 : index
    %25 = vector.load %arg10[%c0_22, %c0_23] : memref<256x512xf32, #tpu.memory_space<vmem>>, vector<256x512xf32>
    %cst_24 = arith.constant dense<0.000000e+00> : vector<2x512xf32>
    %26 = tpu.matmul %24, %25, %cst_24 {dimension_numbers = #tpu.dot_dimension_numbers<[1], [0], [0], [1], [0, 0, 1, 1], [], []>} : vector<2x256xf32>, vector<256x512xf32>, vector<2x512xf32> -> vector<2x512xf32>
    %c0_25 = arith.constant 0 : index
    %c0_26 = arith.constant 0 : index
    %27 = vector.load %arg11[%c0_25, %c0_26] : memref<1x512xf32, #tpu.memory_space<vmem>>, vector<1x512xf32>
    %28 = vector.broadcast %27 : vector<1x512xf32> to vector<2x512xf32>
    %29 = arith.addf %26, %28 : vector<2x512xf32>
    %cst_27 = arith.constant 0.000000e+00 : f32
    %30 = vector.broadcast %cst_27 : f32 to vector<2x512xf32>
    %31 = arith.maximumf %29, %30 : vector<2x512xf32>
    %c0_28 = arith.constant 0 : index
    %c0_29 = arith.constant 0 : index
    %32 = vector.load %arg12[%c0_28, %c0_29] : memref<512x256xf32, #tpu.memory_space<vmem>>, vector<512x256xf32>
    %cst_30 = arith.constant dense<0.000000e+00> : vector<2x256xf32>
    %33 = tpu.matmul %31, %32, %cst_30 {dimension_numbers = #tpu.dot_dimension_numbers<[1], [0], [0], [1], [0, 0, 1, 1], [], []>} : vector<2x512xf32>, vector<512x256xf32>, vector<2x256xf32> -> vector<2x256xf32>
    %c0_31 = arith.constant 0 : index
    %c0_32 = arith.constant 0 : index
    %34 = vector.load %arg13[%c0_31, %c0_32] : memref<1x256xf32, #tpu.memory_space<vmem>>, vector<1x256xf32>
    %35 = vector.broadcast %34 : vector<1x256xf32> to vector<2x256xf32>
    %36 = arith.addf %33, %35 : vector<2x256xf32>
    %c0_33 = arith.constant 0 : index
    %c0_34 = arith.constant 0 : index
    %37 = vector.load %arg14[%c0_33, %c0_34] : memref<2x256xf32, #tpu.memory_space<vmem>>, vector<2x256xf32>
    tpu.vector_store %arg14[%c0_33, %c0_34], %36 {strides = array<i32>} : memref<2x256xf32, #tpu.memory_space<vmem>>, vector<2x256xf32>,
    return
  }
  func.func @transform_0(%arg0: i32) -> (i32, i32) {
    %c0_i32 = arith.constant 0 : i32
    %c0_i32_0 = arith.constant 0 : i32
    return %arg0, %c0_i32 : i32, i32
  }
  func.func @transform_1(%arg0: i32) -> (i32, i32) {
    %c0_i32 = arith.constant 0 : i32
    %c0_i32_0 = arith.constant 0 : i32
    %c0_i32_1 = arith.constant 0 : i32
    return %c0_i32, %c0_i32_0 : i32, i32
  }
  func.func @transform_2(%arg0: i32) -> (i32, i32) {
    %c0_i32 = arith.constant 0 : i32
    %c0_i32_0 = arith.constant 0 : i32
    %c0_i32_1 = arith.constant 0 : i32
    return %c0_i32, %c0_i32_0 : i32, i32
  }
  func.func @transform_3(%arg0: i32) -> (i32, i32) {
    %c0_i32 = arith.constant 0 : i32
    %c0_i32_0 = arith.constant 0 : i32
    %c0_i32_1 = arith.constant 0 : i32
    return %c0_i32, %c0_i32_0 : i32, i32
  }
  func.func @transform_4(%arg0: i32) -> (i32, i32) {
    %c0_i32 = arith.constant 0 : i32
    %c0_i32_0 = arith.constant 0 : i32
    %c0_i32_1 = arith.constant 0 : i32
    return %c0_i32, %c0_i32_0 : i32, i32
  }
  func.func @transform_5(%arg0: i32) -> (i32, i32) {
    %c0_i32 = arith.constant 0 : i32
    %c0_i32_0 = arith.constant 0 : i32
    %c0_i32_1 = arith.constant 0 : i32
    return %c0_i32, %c0_i32_0 : i32, i32
  }
  func.func @transform_6(%arg0: i32) -> (i32, i32) {
    %c0_i32 = arith.constant 0 : i32
    %c0_i32_0 = arith.constant 0 : i32
    %c0_i32_1 = arith.constant 0 : i32
    return %c0_i32, %c0_i32_0 : i32, i32
  }
  func.func @transform_7(%arg0: i32) -> (i32, i32) {
    %c0_i32 = arith.constant 0 : i32
    %c0_i32_0 = arith.constant 0 : i32
    %c0_i32_1 = arith.constant 0 : i32
    return %c0_i32, %c0_i32_0 : i32, i32
  }
  func.func @transform_8(%arg0: i32) -> (i32, i32) {
    %c0_i32 = arith.constant 0 : i32
    %c0_i32_0 = arith.constant 0 : i32
    %c0_i32_1 = arith.constant 0 : i32
    return %c0_i32, %c0_i32_0 : i32, i32
  }
  func.func @transform_9(%arg0: i32) -> (i32, i32) {
    %c0_i32 = arith.constant 0 : i32
    %c0_i32_0 = arith.constant 0 : i32
    %c0_i32_1 = arith.constant 0 : i32
    return %c0_i32, %c0_i32_0 : i32, i32
  }
  func.func @transform_10(%arg0: i32) -> (i32, i32) {
    %c0_i32 = arith.constant 0 : i32
    %c0_i32_0 = arith.constant 0 : i32
    %c0_i32_1 = arith.constant 0 : i32
    return %c0_i32, %c0_i32_0 : i32, i32
  }
  func.func @transform_11(%arg0: i32) -> (i32, i32) {
    %c0_i32 = arith.constant 0 : i32
    %c0_i32_0 = arith.constant 0 : i32
    %c0_i32_1 = arith.constant 0 : i32
    return %c0_i32, %c0_i32_0 : i32, i32
  }
  func.func @transform_12(%arg0: i32) -> (i32, i32) {
    %c0_i32 = arith.constant 0 : i32
    %c0_i32_0 = arith.constant 0 : i32
    %c0_i32_1 = arith.constant 0 : i32
    return %c0_i32, %c0_i32_0 : i32, i32
  }
  func.func @transform_13(%arg0: i32) -> (i32, i32) {
    %c0_i32 = arith.constant 0 : i32
    %c0_i32_0 = arith.constant 0 : i32
    return %arg0, %c0_i32 : i32, i32
  }
}

</mosaic_0001>

<bundles_post_ra>
// kernel: autoencoder_forward.1
= control target key start
LH: loop header
LB: loop body
LE: loop exit
PB: predicated region body
PF: predicated region fallthrough
CT: control target
= control target key end

     0   :  { %18 = vsyncpa [#allocation3], 0  ;;  %s2231_s0 = inlined_call_operand.vmem [shape: f32[2,256], index: 0, kind: input, shape index: {}]   ;;  %s2232_s1 = inlined_call_operand.vmem [shape: f32[256,512], index: 1, kind: input, shape index: {}]   ;;  %s2233_s2 = inlined_call_operand.vmem [shape: f32[1,512], index: 2, kind: input, shape index: {}]   ;;  %s2234_s3 = inlined_call_operand.hbm [shape: f32[512,256], index: 3, kind: input, shape index: {}]   ;;  %s2235_s4 = inlined_call_operand.vmem [shape: f32[1,256], index: 4, kind: input, shape index: {}]   ;;  %s2236_s5 = inlined_call_operand.vmem [shape: f32[256,32], index: 5, kind: input, shape index: {}]   ;;  %s2237_s6 = inlined_call_operand.vmem [shape: f32[1,32], index: 6, kind: input, shape index: {}]   ;;  %s2238_s7 = inlined_call_operand.vmem [shape: f32[32,256], index: 7, kind: input, shape index: {}]   ;;  %s2239_s8 = inlined_call_operand.vmem [shape: f32[1,256], index: 8, kind: input, shape index: {}]   ;;  %s2240_s9 = inlined_call_operand.hbm [shape: f32[256,512], index: 9, kind: input, shape index: {}]   ;;  %s2241_s10 = inlined_call_operand.vmem [shape: f32[1,512], index: 10, kind: input, shape index: {}]   ;;  %s2242_s11 = inlined_call_operand.hbm [shape: f32[512,256], index: 11, kind: input, shape index: {}]   ;;  %s2243_s12 = inlined_call_operand.vmem [shape: f32[1,256], index: 12, kind: input, shape index: {}]   ;;  %s2244_s13 = inlined_call_operand.vmem [shape: f32[2,256], index: 13, kind: output, shape index: {}]  }
   0x1   :  { %19 = vsyncpa [#allocation5], 0  ;;  %s1588_s25 = smov [#allocation4]  }
   0x2   :  { %s53_s26 = sshll.u32 %s1588_s25, 4  ;;  %s54_s26 = int_to_ptr.vmem [resolvable:$true] %s53_s26 }
   0x3   :  { %s1532_s27 = scalar_lea.vmem %s54_s26, 16384  ;;  %p1537_p1 = scmp.lt.s32.totalorder %s54_s26, %s54_s26 }
   0x4   :  { %p1533_p0 = scmp.ne.s32.totalorder %s54_s26, %s1532_s27  ;;  %p1538_p2 = scmp.lt.s32.totalorder %s1532_s27, %s1532_s27 }
   0x6   :  { %p1539_p3 = por %p1538_p2, %p1537_p1 }
   0x8   :  { %p1540_p4 = pnand %p1539_p3, %p1533_p0 }
   0xa   :  { %1543 = shalt.err (!%p1540_p4)
}
   0xb   :  { %s1589_s28 = smov 512   ;;  %s1590_s29 = smov 32  }
   0xc   :  { %59 = dma.hbm_to_vmem [thread:$0]  %s2240_s9, 16384, %s54_s26, [#allocation5], %s1589_s28, %s1589_s28, %s1590_s29  }
   0xd   :  { %s1591_s15 = smov [#allocation2]  }
   0xe   :  { %s31_s16 = sshll.u32 %s1591_s15, 4  ;;  %s32_s16 = int_to_ptr.vmem [resolvable:$true] %s31_s16 }
   0xf   :  { %s1552_s17 = scalar_lea.vmem %s32_s16, 16384  ;;  %p1557_p6 = scmp.lt.s32.totalorder %s32_s16, %s32_s16 }
  0x10   :  { %p1553_p5 = scmp.ne.s32.totalorder %s32_s16, %s1552_s17  ;;  %p1558_p7 = scmp.lt.s32.totalorder %s1552_s17, %s1552_s17 }
  0x12   :  { %p1559_p8 = por %p1558_p7, %p1557_p6 }
  0x14   :  { %p1560_p9 = pnand %p1559_p8, %p1553_p5 }
  0x16   :  { %1563 = shalt.err (!%p1560_p9)
}
  0x17   :  { %s1592_s18 = smov 256   ;;  %s1593_s19 = smov 16  }
  0x18   :  { %37 = dma.hbm_to_vmem [thread:$0]  %s2234_s3, 16384, %s32_s16, [#allocation3], %s1592_s18, %s1592_s18, %s1593_s19  }
  0x19   :  { %s1594_s22 = smov [#allocation6]  }
  0x1a   :  { %s67_s23 = sshll.u32 %s1594_s22, 4  ;;  %s68_s23 = int_to_ptr.vmem [resolvable:$true] %s67_s23 }
  0x1b   :  { %s1572_s9 = scalar_lea.vmem %s68_s23, 16384  ;;  %p1577_p11 = scmp.lt.s32.totalorder %s68_s23, %s68_s23 }
  0x1c   :  { %p1573_p10 = scmp.ne.s32.totalorder %s68_s23, %s1572_s9  ;;  %p1578_p12 = scmp.lt.s32.totalorder %s1572_s9, %s1572_s9 }
  0x1e   :  { %p1579_p13 = por %p1578_p12, %p1577_p11 }
  0x20   :  { %p1580_p0 = pnand %p1579_p13, %p1573_p10 }
  0x22   :  { %1583 = shalt.err (!%p1580_p0)
}
  0x23   :  { %73 = dma.hbm_to_vmem [thread:$0]  %s2242_s11, 16384, %s68_s23, [#allocation5], %s1592_s18, %s1592_s18, %s1593_s19  }
  0x24   :  { %1584 = dma.done.wait [#allocation3], 16384  }
  0x25   :  { %1585 = vsyncadd [#allocation3], 4294950912 }
  0x26   :  { %1586 = dma.done.wait [#allocation5], 32768  }
  0x27   :  { %1587 = vsyncadd [#allocation5], 4294934528  ;;  %v147_v0 = vld [vmem:[%s2232_s1 + $0x1e8] sm:$0xff]  ;;  %v149_v1 = vld [vmem:[%s2232_s1 + $0x1f8] sm:$0xff]  ;;  %vm806_vm0 = vcmask 261120  }
  0x28   :  { %v146_v2 = vld [vmem:[%s2232_s1 + $0x1e0] sm:$0xff]  ;;  %247 = vmatprep.subr.mxu0 %v147_v0  ;;  %318 = vmatprep.subr.mxu1 %v149_v1  ;;  %v148_v3 = vld [vmem:[%s2232_s1 + $0x1f0] sm:$0xff]  ;;  %v143_v4 = vld [vmem:[%s2232_s1 + $0x1c8] sm:$0xff] }
  0x29   :  { %v145_v5 = vld [vmem:[%s2232_s1 + $0x1d8] sm:$0xff]  ;;  %248 = vmatpush1.msra.mxu0 %v146_v2  ;;  %319 = vmatpush1.msra.mxu1 %v148_v3  ;;  %v142_v6 = vld [vmem:[%s2232_s1 + $0x1c0] sm:$0xff]  ;;  %v144_v7 = vld [vmem:[%s2232_s1 + $0x1d0] sm:$0xff] }
  0x2a   :  { %v139_v8 = vld [vmem:[%s2232_s1 + $0x1a8] sm:$0xff]  ;;  %249 = vmatprep.subr.mxu0 %v143_v4  ;;  %320 = vmatprep.subr.mxu1 %v145_v5  ;;  %v141_v9 = vld [vmem:[%s2232_s1 + $0x1b8] sm:$0xff]  ;;  %v138_v10 = vld [vmem:[%s2232_s1 + $0x1a0] sm:$0xff] }
  0x2b   :  { %v140_v11 = vld [vmem:[%s2232_s1 + $0x1b0] sm:$0xff]  ;;  %250 = vmatpush1.msra.mxu0 %v142_v6  ;;  %321 = vmatpush1.msra.mxu1 %v144_v7  ;;  %v135_v12 = vld [vmem:[%s2232_s1 + $0x188] sm:$0xff]  ;;  %v137_v13 = vld [vmem:[%s2232_s1 + $0x198] sm:$0xff] }
  0x2c   :  { %251 = vmatprep.subr.mxu0 %v139_v8  ;;  %322 = vmatprep.subr.mxu1 %v141_v9  ;;  %v134_v14 = vld [vmem:[%s2232_s1 + $0x180] sm:$0xff]  ;;  %v136_v15 = vld [vmem:[%s2232_s1 + $0x190] sm:$0xff]  ;;  %v131_v16 = vld [vmem:[%s2232_s1 + $0x168] sm:$0xff] }
  0x2d   :  { %252 = vmatpush1.msra.mxu0 %v138_v10  ;;  %323 = vmatpush1.msra.mxu1 %v140_v11  ;;  %v133_v17 = vld [vmem:[%s2232_s1 + $0x178] sm:$0xff]  ;;  %v130_v18 = vld [vmem:[%s2232_s1 + $0x160] sm:$0xff]  ;;  %v132_v19 = vld [vmem:[%s2232_s1 + $0x170] sm:$0xff] }
  0x2e   :  { %253 = vmatprep.subr.mxu0 %v135_v12  ;;  %324 = vmatprep.subr.mxu1 %v137_v13  ;;  %v127_v20 = vld [vmem:[%s2232_s1 + $0x148] sm:$0xff]  ;;  %v129_v21 = vld [vmem:[%s2232_s1 + $0x158] sm:$0xff]  ;;  %v126_v22 = vld [vmem:[%s2232_s1 + $0x140] sm:$0xff] }
  0x2f   :  { %254 = vmatpush1.msra.mxu0 %v134_v14  ;;  %325 = vmatpush1.msra.mxu1 %v136_v15  ;;  %v128_v23 = vld [vmem:[%s2232_s1 + $0x150] sm:$0xff]  ;;  %v123_v24 = vld [vmem:[%s2232_s1 + $0x128] sm:$0xff]  ;;  %v125_v25 = vld [vmem:[%s2232_s1 + $0x138] sm:$0xff] }
  0x30   :  { %255 = vmatprep.subr.mxu0 %v131_v16  ;;  %326 = vmatprep.subr.mxu1 %v133_v17  ;;  %v122_v26 = vld [vmem:[%s2232_s1 + $0x120] sm:$0xff]  ;;  %v124_v27 = vld [vmem:[%s2232_s1 + $0x130] sm:$0xff]  ;;  %v119_v28 = vld [vmem:[%s2232_s1 + $0x108] sm:$0xff] }
  0x31   :  { %256 = vmatpush1.msra.mxu0 %v130_v18  ;;  %327 = vmatpush1.msra.mxu1 %v132_v19  ;;  %v121_v29 = vld [vmem:[%s2232_s1 + $0x118] sm:$0xff]  ;;  %v118_v30 = vld [vmem:[%s2232_s1 + $0x100] sm:$0xff]  ;;  %v120_v31 = vld [vmem:[%s2232_s1 + $0x110] sm:$0xff] }
  0x32   :  { %257 = vmatprep.subr.mxu0 %v127_v20  ;;  %328 = vmatprep.subr.mxu1 %v129_v21  ;;  %v115_v32 = vld [vmem:[%s2232_s1 + $0xe8] sm:$0xff]  ;;  %v117_v33 = vld [vmem:[%s2232_s1 + $0xf8] sm:$0xff]  ;;  %v114_v34 = vld [vmem:[%s2232_s1 + $0xe0] sm:$0xff] }
  0x33   :  { %258 = vmatpush1.msra.mxu0 %v126_v22  ;;  %329 = vmatpush1.msra.mxu1 %v128_v23  ;;  %v116_v35 = vld [vmem:[%s2232_s1 + $0xf0] sm:$0xff]  ;;  %v111_v36 = vld [vmem:[%s2232_s1 + $0xc8] sm:$0xff]  ;;  %v113_v37 = vld [vmem:[%s2232_s1 + $0xd8] sm:$0xff] }
  0x34   :  { %259 = vmatprep.subr.mxu0 %v123_v24  ;;  %330 = vmatprep.subr.mxu1 %v125_v25  ;;  %v110_v38 = vld [vmem:[%s2232_s1 + $0xc0] sm:$0xff]  ;;  %v112_v39 = vld [vmem:[%s2232_s1 + $0xd0] sm:$0xff]  ;;  %v107_v40 = vld [vmem:[%s2232_s1 + $0xa8] sm:$0xff] }
  0x35   :  { %260 = vmatpush1.msra.mxu0 %v122_v26  ;;  %331 = vmatpush1.msra.mxu1 %v124_v27  ;;  %v109_v41 = vld [vmem:[%s2232_s1 + $0xb8] sm:$0xff]  ;;  %v106_v42 = vld [vmem:[%s2232_s1 + $0xa0] sm:$0xff]  ;;  %v108_v43 = vld [vmem:[%s2232_s1 + $0xb0] sm:$0xff] }
  0x36   :  { %261 = vmatprep.subr.mxu0 %v119_v28  ;;  %332 = vmatprep.subr.mxu1 %v121_v29  ;;  %v103_v44 = vld [vmem:[%s2232_s1 + $0x88] sm:$0xff]  ;;  %v105_v45 = vld [vmem:[%s2232_s1 + $0x98] sm:$0xff]  ;;  %v102_v46 = vld [vmem:[%s2232_s1 + $0x80] sm:$0xff] }
  0x37   :  { %262 = vmatpush1.msra.mxu0 %v118_v30  ;;  %333 = vmatpush1.msra.mxu1 %v120_v31  ;;  %v104_v47 = vld [vmem:[%s2232_s1 + $0x90] sm:$0xff]  ;;  %v99_v48 = vld [vmem:[%s2232_s1 + $0x68] sm:$0xff]  ;;  %v101_v49 = vld [vmem:[%s2232_s1 + $0x78] sm:$0xff] }
  0x38   :  { %263 = vmatprep.subr.mxu0 %v115_v32  ;;  %334 = vmatprep.subr.mxu1 %v117_v33  ;;  %v98_v50 = vld [vmem:[%s2232_s1 + $0x60] sm:$0xff]  ;;  %v100_v51 = vld [vmem:[%s2232_s1 + $0x70] sm:$0xff]  ;;  %v95_v52 = vld [vmem:[%s2232_s1 + $0x48] sm:$0xff] }
  0x39   :  { %264 = vmatpush1.msra.mxu0 %v114_v34  ;;  %335 = vmatpush1.msra.mxu1 %v116_v35  ;;  %v97_v53 = vld [vmem:[%s2232_s1 + $0x58] sm:$0xff]  ;;  %v94_v54 = vld [vmem:[%s2232_s1 + $0x40] sm:$0xff]  ;;  %v96_v55 = vld [vmem:[%s2232_s1 + $0x50] sm:$0xff] }
  0x3a   :  { %265 = vmatprep.subr.mxu0 %v111_v36  ;;  %336 = vmatprep.subr.mxu1 %v113_v37  ;;  %v91_v56 = vld [vmem:[%s2232_s1 + $0x28] sm:$0xff]  ;;  %v93_v57 = vld [vmem:[%s2232_s1 + $0x38] sm:$0xff]  ;;  %v90_v58 = vld [vmem:[%s2232_s1 + $0x20] sm:$0xff] }
  0x3b   :  { %266 = vmatpush1.msra.mxu0 %v110_v38  ;;  %337 = vmatpush1.msra.mxu1 %v112_v39  ;;  %v92_v59 = vld [vmem:[%s2232_s1 + $0x30] sm:$0xff]  ;;  %v87_v60 = vld [vmem:[%s2232_s1 + $0x8] sm:$0xff]  ;;  %v89_v61 = vld [vmem:[%s2232_s1 + $0x18] sm:$0xff] }
  0x3c   :  { %267 = vmatprep.subr.mxu0 %v107_v40  ;;  %338 = vmatprep.subr.mxu1 %v109_v41  ;;  %v86_v62 = vld [vmem:[%s2232_s1] sm:$0xff]  ;;  %v88_v63 = vld [vmem:[%s2232_s1 + $0x10] sm:$0xff]  ;;  %v211_v0 = vld [vmem:[%s2232_s1 + $0x3e8] sm:$0xff] }
  0x3d   :  { %268 = vmatpush1.msra.mxu0 %v106_v42  ;;  %339 = vmatpush1.msra.mxu1 %v108_v43  ;;  %v213_v1 = vld [vmem:[%s2232_s1 + $0x3f8] sm:$0xff]  ;;  %v210_v2 = vld [vmem:[%s2232_s1 + $0x3e0] sm:$0xff]  ;;  %v212_v3 = vld [vmem:[%s2232_s1 + $0x3f0] sm:$0xff] }
  0x3e   :  { %269 = vmatprep.subr.mxu0 %v103_v44  ;;  %340 = vmatprep.subr.mxu1 %v105_v45  ;;  %v207_v4 = vld [vmem:[%s2232_s1 + $0x3c8] sm:$0xff]  ;;  %v209_v5 = vld [vmem:[%s2232_s1 + $0x3d8] sm:$0xff]  ;;  %v206_v6 = vld [vmem:[%s2232_s1 + $0x3c0] sm:$0xff] }
  0x3f   :  { %270 = vmatpush1.msra.mxu0 %v102_v46  ;;  %341 = vmatpush1.msra.mxu1 %v104_v47  ;;  %v208_v7 = vld [vmem:[%s2232_s1 + $0x3d0] sm:$0xff]  ;;  %v203_v8 = vld [vmem:[%s2232_s1 + $0x3a8] sm:$0xff]  ;;  %v205_v9 = vld [vmem:[%s2232_s1 + $0x3b8] sm:$0xff] }
  0x40   :  { %271 = vmatprep.subr.mxu0 %v99_v48  ;;  %342 = vmatprep.subr.mxu1 %v101_v49  ;;  %v202_v10 = vld [vmem:[%s2232_s1 + $0x3a0] sm:$0xff]  ;;  %v204_v11 = vld [vmem:[%s2232_s1 + $0x3b0] sm:$0xff]  ;;  %v199_v12 = vld [vmem:[%s2232_s1 + $0x388] sm:$0xff] }
  0x41   :  { %272 = vmatpush1.msra.mxu0 %v98_v50  ;;  %343 = vmatpush1.msra.mxu1 %v100_v51  ;;  %v201_v13 = vld [vmem:[%s2232_s1 + $0x398] sm:$0xff]  ;;  %v198_v14 = vld [vmem:[%s2232_s1 + $0x380] sm:$0xff]  ;;  %v200_v15 = vld [vmem:[%s2232_s1 + $0x390] sm:$0xff] }
  0x42   :  { %273 = vmatprep.subr.mxu0 %v95_v52  ;;  %344 = vmatprep.subr.mxu1 %v97_v53  ;;  %v195_v16 = vld [vmem:[%s2232_s1 + $0x368] sm:$0xff]  ;;  %v197_v17 = vld [vmem:[%s2232_s1 + $0x378] sm:$0xff]  ;;  %v194_v18 = vld [vmem:[%s2232_s1 + $0x360] sm:$0xff] }
  0x43   :  { %274 = vmatpush1.msra.mxu0 %v94_v54  ;;  %345 = vmatpush1.msra.mxu1 %v96_v55  ;;  %v196_v19 = vld [vmem:[%s2232_s1 + $0x370] sm:$0xff]  ;;  %v191_v20 = vld [vmem:[%s2232_s1 + $0x348] sm:$0xff]  ;;  %v193_v21 = vld [vmem:[%s2232_s1 + $0x358] sm:$0xff] }
  0x44   :  { %275 = vmatprep.subr.mxu0 %v91_v56  ;;  %346 = vmatprep.subr.mxu1 %v93_v57  ;;  %v190_v22 = vld [vmem:[%s2232_s1 + $0x340] sm:$0xff]  ;;  %v192_v23 = vld [vmem:[%s2232_s1 + $0x350] sm:$0xff]  ;;  %v187_v24 = vld [vmem:[%s2232_s1 + $0x328] sm:$0xff] }
  0x45   :  { %276 = vmatpush1.msra.mxu0 %v90_v58  ;;  %347 = vmatpush1.msra.mxu1 %v92_v59  ;;  %v189_v25 = vld [vmem:[%s2232_s1 + $0x338] sm:$0xff]  ;;  %v186_v26 = vld [vmem:[%s2232_s1 + $0x320] sm:$0xff]  ;;  %v188_v27 = vld [vmem:[%s2232_s1 + $0x330] sm:$0xff] }
  0x46   :  { %277 = vmatprep.subr.mxu0 %v87_v60  ;;  %348 = vmatprep.subr.mxu1 %v89_v61  ;;  %v183_v28 = vld [vmem:[%s2232_s1 + $0x308] sm:$0xff]  ;;  %v185_v29 = vld [vmem:[%s2232_s1 + $0x318] sm:$0xff]  ;;  %v182_v30 = vld [vmem:[%s2232_s1 + $0x300] sm:$0xff] }
  0x47   :  { %278 = vmatpush1.msra.mxu0 %v86_v62  ;;  %349 = vmatpush1.msra.mxu1 %v88_v63  ;;  %v184_v31 = vld [vmem:[%s2232_s1 + $0x310] sm:$0xff]  ;;  %v179_v32 = vld [vmem:[%s2232_s1 + $0x2e8] sm:$0xff]  ;;  %v181_v33 = vld [vmem:[%s2232_s1 + $0x2f8] sm:$0xff] }
  0x48   :  { %279 = vmatprep.subr.mxu0 %v211_v0  ;;  %350 = vmatprep.subr.mxu1 %v213_v1  ;;  %v178_v34 = vld [vmem:[%s2232_s1 + $0x2e0] sm:$0xff]  ;;  %v180_v35 = vld [vmem:[%s2232_s1 + $0x2f0] sm:$0xff]  ;;  %v175_v36 = vld [vmem:[%s2232_s1 + $0x2c8] sm:$0xff] }
  0x49   :  { %280 = vmatpush2.msra.mxu0 %v210_v2  ;;  %351 = vmatpush2.msra.mxu1 %v212_v3  ;;  %v177_v37 = vld [vmem:[%s2232_s1 + $0x2d8] sm:$0xff]  ;;  %v174_v38 = vld [vmem:[%s2232_s1 + $0x2c0] sm:$0xff]  ;;  %v176_v39 = vld [vmem:[%s2232_s1 + $0x2d0] sm:$0xff] }
  0x4a   :  { %281 = vmatprep.subr.mxu0 %v207_v4  ;;  %352 = vmatprep.subr.mxu1 %v209_v5  ;;  %v171_v40 = vld [vmem:[%s2232_s1 + $0x2a8] sm:$0xff]  ;;  %v173_v41 = vld [vmem:[%s2232_s1 + $0x2b8] sm:$0xff]  ;;  %v170_v42 = vld [vmem:[%s2232_s1 + $0x2a0] sm:$0xff] }
  0x4b   :  { %282 = vmatpush2.msra.mxu0 %v206_v6  ;;  %353 = vmatpush2.msra.mxu1 %v208_v7  ;;  %v172_v43 = vld [vmem:[%s2232_s1 + $0x2b0] sm:$0xff]  ;;  %v167_v44 = vld [vmem:[%s2232_s1 + $0x288] sm:$0xff]  ;;  %v169_v45 = vld [vmem:[%s2232_s1 + $0x298] sm:$0xff] }
  0x4c   :  { %283 = vmatprep.subr.mxu0 %v203_v8  ;;  %354 = vmatprep.subr.mxu1 %v205_v9  ;;  %v166_v46 = vld [vmem:[%s2232_s1 + $0x280] sm:$0xff]  ;;  %v168_v47 = vld [vmem:[%s2232_s1 + $0x290] sm:$0xff]  ;;  %v163_v48 = vld [vmem:[%s2232_s1 + $0x268] sm:$0xff] }
  0x4d   :  { %284 = vmatpush2.msra.mxu0 %v202_v10  ;;  %355 = vmatpush2.msra.mxu1 %v204_v11  ;;  %v165_v49 = vld [vmem:[%s2232_s1 + $0x278] sm:$0xff]  ;;  %v162_v50 = vld [vmem:[%s2232_s1 + $0x260] sm:$0xff]  ;;  %v164_v51 = vld [vmem:[%s2232_s1 + $0x270] sm:$0xff] }
  0x4e   :  { %285 = vmatprep.subr.mxu0 %v199_v12  ;;  %356 = vmatprep.subr.mxu1 %v201_v13  ;;  %v159_v52 = vld [vmem:[%s2232_s1 + $0x248] sm:$0xff]  ;;  %v161_v53 = vld [vmem:[%s2232_s1 + $0x258] sm:$0xff]  ;;  %v158_v54 = vld [vmem:[%s2232_s1 + $0x240] sm:$0xff] }
  0x4f   :  { %286 = vmatpush2.msra.mxu0 %v198_v14  ;;  %357 = vmatpush2.msra.mxu1 %v200_v15  ;;  %v160_v55 = vld [vmem:[%s2232_s1 + $0x250] sm:$0xff]  ;;  %v1477_v56 = vld.sshfl [vmem:[%s2231_s0] sm:$0x33 pattern:$0x76325410]  ;;  %v155_v57 = vld [vmem:[%s2232_s1 + $0x228] sm:$0xff] }
  0x50   :  { %287 = vmatprep.subr.mxu0 %v195_v16  ;;  %358 = vmatprep.subr.mxu1 %v197_v17  ;;  %v157_v58 = vld [vmem:[%s2232_s1 + $0x238] sm:$0xff]  ;;  %v154_v59 = vld [vmem:[%s2232_s1 + $0x220] sm:$0xff]  ;;  %v156_v60 = vld [vmem:[%s2232_s1 + $0x230] sm:$0xff]  ;;  %v244_v63 = vcombine.high %v1477_v56, %v1477_v56 }
  0x51   :  { %288 = vmatpush2.msra.mxu0 %v194_v18  ;;  %359 = vmatpush2.msra.mxu1 %v196_v19  ;;  %v151_v61 = vld [vmem:[%s2232_s1 + $0x208] sm:$0xff]  ;;  %v153_v62 = vld [vmem:[%s2232_s1 + $0x218] sm:$0xff]  ;;  %v150_v0 = vld [vmem:[%s2232_s1 + $0x200] sm:$0xff] }
  0x52   :  { %289 = vmatprep.subr.mxu0 %v191_v20  ;;  %360 = vmatprep.subr.mxu1 %v193_v21  ;;  %v152_v1 = vld [vmem:[%s2232_s1 + $0x210] sm:$0xff]  ;;  %v424_v2 = vld [vmem:[#allocation2 + $0xf8] sm:$0xff]  ;;  %v422_v6 = vld [vmem:[#allocation2 + $0xe8] sm:$0xff] }
  0x53   :  { %290 = vmatpush2.msra.mxu0 %v190_v22  ;;  %361 = vmatpush2.msra.mxu1 %v192_v23  ;;  %v488_v3 = vld [vmem:[#allocation2 + $0x2f8] sm:$0xff]  ;;  %v423_v4 = vld [vmem:[#allocation2 + $0xf0] sm:$0xff]  ;;  %v486_v7 = vld [vmem:[#allocation2 + $0x2e8] sm:$0xff] }
  0x54   :  { %291 = vmatprep.subr.mxu0 %v187_v24  ;;  %362 = vmatprep.subr.mxu1 %v189_v25  ;;  %v487_v5 = vld [vmem:[#allocation2 + $0x2f0] sm:$0xff]  ;;  %v421_v8 = vld [vmem:[#allocation2 + $0xe0] sm:$0xff]  ;;  %v420_v10 = vld [vmem:[#allocation2 + $0xd8] sm:$0xff] }
  0x55   :  { %292 = vmatpush2.msra.mxu0 %v186_v26  ;;  %363 = vmatpush2.msra.mxu1 %v188_v27  ;;  %v485_v9 = vld [vmem:[#allocation2 + $0x2e0] sm:$0xff]  ;;  %v484_v11 = vld [vmem:[#allocation2 + $0x2d8] sm:$0xff]  ;;  %v419_v12 = vld [vmem:[#allocation2 + $0xd0] sm:$0xff] }
  0x56   :  { %293 = vmatprep.subr.mxu0 %v183_v28  ;;  %364 = vmatprep.subr.mxu1 %v185_v29  ;;  %v483_v13 = vld [vmem:[#allocation2 + $0x2d0] sm:$0xff]  ;;  %v418_v14 = vld [vmem:[#allocation2 + $0xc8] sm:$0xff]  ;;  %v417_v16 = vld [vmem:[#allocation2 + $0xc0] sm:$0xff] }
  0x57   :  { %294 = vmatpush2.msra.mxu0 %v182_v30  ;;  %365 = vmatpush2.msra.mxu1 %v184_v31  ;;  %v482_v15 = vld [vmem:[#allocation2 + $0x2c8] sm:$0xff]  ;;  %v481_v17 = vld [vmem:[#allocation2 + $0x2c0] sm:$0xff]  ;;  %v416_v18 = vld [vmem:[#allocation2 + $0xb8] sm:$0xff] }
  0x58   :  { %295 = vmatprep.subr.mxu0 %v179_v32  ;;  %366 = vmatprep.subr.mxu1 %v181_v33  ;;  %v480_v19 = vld [vmem:[#allocation2 + $0x2b8] sm:$0xff]  ;;  %v415_v20 = vld [vmem:[#allocation2 + $0xb0] sm:$0xff]  ;;  %v414_v22 = vld [vmem:[#allocation2 + $0xa8] sm:$0xff] }
  0x59   :  { %296 = vmatpush2.msra.mxu0 %v178_v34  ;;  %367 = vmatpush2.msra.mxu1 %v180_v35  ;;  %v479_v21 = vld [vmem:[#allocation2 + $0x2b0] sm:$0xff]  ;;  %v478_v23 = vld [vmem:[#allocation2 + $0x2a8] sm:$0xff]  ;;  %v413_v24 = vld [vmem:[#allocation2 + $0xa0] sm:$0xff] }
  0x5a   :  { %297 = vmatprep.subr.mxu0 %v175_v36  ;;  %368 = vmatprep.subr.mxu1 %v177_v37  ;;  %v477_v25 = vld [vmem:[#allocation2 + $0x2a0] sm:$0xff]  ;;  %v412_v26 = vld [vmem:[#allocation2 + $0x98] sm:$0xff]  ;;  %v411_v28 = vld [vmem:[#allocation2 + $0x90] sm:$0xff] }
  0x5b   :  { %298 = vmatpush2.msra.mxu0 %v174_v38  ;;  %369 = vmatpush2.msra.mxu1 %v176_v39  ;;  %v476_v27 = vld [vmem:[#allocation2 + $0x298] sm:$0xff]  ;;  %v475_v29 = vld [vmem:[#allocation2 + $0x290] sm:$0xff]  ;;  %v410_v30 = vld [vmem:[#allocation2 + $0x88] sm:$0xff] }
  0x5c   :  { %299 = vmatprep.subr.mxu0 %v171_v40  ;;  %370 = vmatprep.subr.mxu1 %v173_v41  ;;  %v474_v31 = vld [vmem:[#allocation2 + $0x288] sm:$0xff]  ;;  %v409_v32 = vld [vmem:[#allocation2 + $0x80] sm:$0xff]  ;;  %v408_v34 = vld [vmem:[#allocation2 + $0x78] sm:$0xff] }
  0x5d   :  { %300 = vmatpush2.msra.mxu0 %v170_v42  ;;  %371 = vmatpush2.msra.mxu1 %v172_v43  ;;  %v473_v33 = vld [vmem:[#allocation2 + $0x280] sm:$0xff]  ;;  %v472_v35 = vld [vmem:[#allocation2 + $0x278] sm:$0xff]  ;;  %v407_v36 = vld [vmem:[#allocation2 + $0x70] sm:$0xff] }
  0x5e   :  { %301 = vmatprep.subr.mxu0 %v167_v44  ;;  %372 = vmatprep.subr.mxu1 %v169_v45  ;;  %v471_v37 = vld [vmem:[#allocation2 + $0x270] sm:$0xff]  ;;  %v406_v38 = vld [vmem:[#allocation2 + $0x68] sm:$0xff]  ;;  %v405_v40 = vld [vmem:[#allocation2 + $0x60] sm:$0xff] }
  0x5f   :  { %302 = vmatpush2.msra.mxu0 %v166_v46  ;;  %373 = vmatpush2.msra.mxu1 %v168_v47  ;;  %v470_v39 = vld [vmem:[#allocation2 + $0x268] sm:$0xff]  ;;  %v469_v41 = vld [vmem:[#allocation2 + $0x260] sm:$0xff]  ;;  %v404_v42 = vld [vmem:[#allocation2 + $0x58] sm:$0xff] }
  0x60   :  { %303 = vmatprep.subr.mxu0 %v163_v48  ;;  %374 = vmatprep.subr.mxu1 %v165_v49  ;;  %v468_v43 = vld [vmem:[#allocation2 + $0x258] sm:$0xff]  ;;  %v403_v44 = vld [vmem:[#allocation2 + $0x50] sm:$0xff]  ;;  %v402_v46 = vld [vmem:[#allocation2 + $0x48] sm:$0xff] }
  0x61   :  { %304 = vmatpush2.msra.mxu0 %v162_v50  ;;  %375 = vmatpush2.msra.mxu1 %v164_v51  ;;  %v467_v45 = vld [vmem:[#allocation2 + $0x250] sm:$0xff]  ;;  %v466_v47 = vld [vmem:[#allocation2 + $0x248] sm:$0xff]  ;;  %v401_v48 = vld [vmem:[#allocation2 + $0x40] sm:$0xff] }
  0x62   :  { %305 = vmatprep.subr.mxu0 %v159_v52  ;;  %376 = vmatprep.subr.mxu1 %v161_v53  ;;  %v465_v49 = vld [vmem:[#allocation2 + $0x240] sm:$0xff]  ;;  %v400_v50 = vld [vmem:[#allocation2 + $0x38] sm:$0xff]  ;;  %v399_v52 = vld [vmem:[#allocation2 + $0x30] sm:$0xff] }
  0x63   :  { %306 = vmatpush2.msra.mxu0 %v158_v54  ;;  %377 = vmatpush2.msra.mxu1 %v160_v55  ;;  %v464_v51 = vld [vmem:[#allocation2 + $0x238] sm:$0xff]  ;;  %v463_v53 = vld [vmem:[#allocation2 + $0x230] sm:$0xff]  ;;  %v398_v54 = vld [vmem:[#allocation2 + $0x28] sm:$0xff] }
  0x64   :  { %307 = vmatprep.subr.mxu0 %v155_v57  ;;  %378 = vmatprep.subr.mxu1 %v157_v58  ;;  %v462_v55 = vld [vmem:[#allocation2 + $0x228] sm:$0xff]  ;;  %v461_v57 = vld [vmem:[#allocation2 + $0x220] sm:$0xff]  ;;  %v396_v58 = vld [vmem:[#allocation2 + $0x18] sm:$0xff] }
  0x65   :  { %308 = vmatpush2.msra.mxu0 %v154_v59  ;;  %379 = vmatpush2.msra.mxu1 %v156_v60  ;;  %v460_v59 = vld [vmem:[#allocation2 + $0x218] sm:$0xff]  ;;  %v395_v60 = vld [vmem:[#allocation2 + $0x10] sm:$0xff] }
  0x66   :  { %309 = vmatprep.subr.mxu0 %v151_v61  ;;  %380 = vmatprep.subr.mxu1 %v153_v62  ;;  %v459_v61 = vld [vmem:[#allocation2 + $0x210] sm:$0xff]  ;;  %v394_v62 = vld [vmem:[#allocation2 + $0x8] sm:$0xff] }
  0x67   :  { %310 = vmatpush2.msra.mxu0 %v150_v0  ;;  %311 = vmatprep.mubr.f32.mxu0 %v244_v63  ;;  %v393_v0 = vld [vmem:[#allocation2] sm:$0xff] }
  0x68   :  { %381 = vmatpush2.msra.mxu1 %v152_v1  ;;  %382 = vmatprep.mubr.f32.mxu1 %v244_v63  ;;  %v458_v63 = vld [vmem:[#allocation2 + $0x208] sm:$0xff]  ;;  %v457_v1 = vld [vmem:[#allocation2 + $0x200] sm:$0xff] }
  0x69   :  { %312 = vmatmul.mubr.f32.vlgmr.msra.gmra.mxu0 %v1477_v56  ;;  %383 = vmatmul.mubr.f32.vlgmr.msra.gmra.mxu1 %v1477_v56  ;;  %v397_v56 = vld [vmem:[#allocation2 + $0x20] sm:$0xff] }
  0x6a   :  { %533 = vmatprep.subr.mxu0 %v424_v2  ;;  %604 = vmatprep.subr.mxu1 %v488_v3  ;;  %v456_v2 = vld [vmem:[#allocation2 + $0x1f8] sm:$0xff] }
  0x6b   :  { %534 = vmatpush1.msra.mxu0 %v423_v4  ;;  %605 = vmatpush1.msra.mxu1 %v487_v5  ;;  %v520_v3 = vld [vmem:[#allocation2 + $0x3f8] sm:$0xff]  ;;  %v455_v4 = vld [vmem:[#allocation2 + $0x1f0] sm:$0xff] }
  0x6c   :  { %535 = vmatprep.subr.mxu0 %v422_v6  ;;  %606 = vmatprep.subr.mxu1 %v486_v7  ;;  %v519_v5 = vld [vmem:[#allocation2 + $0x3f0] sm:$0xff]  ;;  %v454_v6 = vld [vmem:[#allocation2 + $0x1e8] sm:$0xff] }
  0x6d   :  { %536 = vmatpush1.msra.mxu0 %v421_v8  ;;  %607 = vmatpush1.msra.mxu1 %v485_v9  ;;  %v518_v7 = vld [vmem:[#allocation2 + $0x3e8] sm:$0xff]  ;;  %v453_v8 = vld [vmem:[#allocation2 + $0x1e0] sm:$0xff] }
  0x6e   :  { %537 = vmatprep.subr.mxu0 %v420_v10  ;;  %608 = vmatprep.subr.mxu1 %v484_v11  ;;  %v517_v9 = vld [vmem:[#allocation2 + $0x3e0] sm:$0xff]  ;;  %v452_v10 = vld [vmem:[#allocation2 + $0x1d8] sm:$0xff] }
  0x6f   :  { %538 = vmatpush1.msra.mxu0 %v419_v12  ;;  %609 = vmatpush1.msra.mxu1 %v483_v13  ;;  %v516_v11 = vld [vmem:[#allocation2 + $0x3d8] sm:$0xff]  ;;  %v451_v12 = vld [vmem:[#allocation2 + $0x1d0] sm:$0xff] }
  0x70   :  { %539 = vmatprep.subr.mxu0 %v418_v14  ;;  %610 = vmatprep.subr.mxu1 %v482_v15  ;;  %v515_v13 = vld [vmem:[#allocation2 + $0x3d0] sm:$0xff]  ;;  %v450_v14 = vld [vmem:[#allocation2 + $0x1c8] sm:$0xff] }
  0x71   :  { %540 = vmatpush1.msra.mxu0 %v417_v16  ;;  %611 = vmatpush1.msra.mxu1 %v481_v17  ;;  %v514_v15 = vld [vmem:[#allocation2 + $0x3c8] sm:$0xff]  ;;  %v449_v16 = vld [vmem:[#allocation2 + $0x1c0] sm:$0xff] }
  0x72   :  { %541 = vmatprep.subr.mxu0 %v416_v18  ;;  %612 = vmatprep.subr.mxu1 %v480_v19  ;;  %v513_v17 = vld [vmem:[#allocation2 + $0x3c0] sm:$0xff]  ;;  %v448_v18 = vld [vmem:[#allocation2 + $0x1b8] sm:$0xff] }
  0x73   :  { %542 = vmatpush1.msra.mxu0 %v415_v20  ;;  %613 = vmatpush1.msra.mxu1 %v479_v21  ;;  %v512_v19 = vld [vmem:[#allocation2 + $0x3b8] sm:$0xff]  ;;  %v447_v20 = vld [vmem:[#allocation2 + $0x1b0] sm:$0xff] }
  0x74   :  { %543 = vmatprep.subr.mxu0 %v414_v22  ;;  %614 = vmatprep.subr.mxu1 %v478_v23  ;;  %v511_v21 = vld [vmem:[#allocation2 + $0x3b0] sm:$0xff]  ;;  %v446_v22 = vld [vmem:[#allocation2 + $0x1a8] sm:$0xff] }
  0x75   :  { %544 = vmatpush1.msra.mxu0 %v413_v24  ;;  %615 = vmatpush1.msra.mxu1 %v477_v25  ;;  %v510_v23 = vld [vmem:[#allocation2 + $0x3a8] sm:$0xff]  ;;  %v445_v24 = vld [vmem:[#allocation2 + $0x1a0] sm:$0xff] }
  0x76   :  { %545 = vmatprep.subr.mxu0 %v412_v26  ;;  %616 = vmatprep.subr.mxu1 %v476_v27  ;;  %v509_v25 = vld [vmem:[#allocation2 + $0x3a0] sm:$0xff]  ;;  %v444_v26 = vld [vmem:[#allocation2 + $0x198] sm:$0xff] }
  0x77   :  { %546 = vmatpush1.msra.mxu0 %v411_v28  ;;  %617 = vmatpush1.msra.mxu1 %v475_v29  ;;  %v508_v27 = vld [vmem:[#allocation2 + $0x398] sm:$0xff]  ;;  %v443_v28 = vld [vmem:[#allocation2 + $0x190] sm:$0xff] }
  0x78   :  { %547 = vmatprep.subr.mxu0 %v410_v30  ;;  %618 = vmatprep.subr.mxu1 %v474_v31  ;;  %v507_v29 = vld [vmem:[#allocation2 + $0x390] sm:$0xff]  ;;  %v442_v30 = vld [vmem:[#allocation2 + $0x188] sm:$0xff] }
  0x79   :  { %548 = vmatpush1.msra.mxu0 %v409_v32  ;;  %619 = vmatpush1.msra.mxu1 %v473_v33  ;;  %v506_v31 = vld [vmem:[#allocation2 + $0x388] sm:$0xff]  ;;  %v441_v32 = vld [vmem:[#allocation2 + $0x180] sm:$0xff] }
  0x7a   :  { %549 = vmatprep.subr.mxu0 %v408_v34  ;;  %620 = vmatprep.subr.mxu1 %v472_v35  ;;  %v505_v33 = vld [vmem:[#allocation2 + $0x380] sm:$0xff]  ;;  %v440_v34 = vld [vmem:[#allocation2 + $0x178] sm:$0xff] }
  0x7b   :  { %550 = vmatpush1.msra.mxu0 %v407_v36  ;;  %621 = vmatpush1.msra.mxu1 %v471_v37  ;;  %v504_v35 = vld [vmem:[#allocation2 + $0x378] sm:$0xff]  ;;  %v439_v36 = vld [vmem:[#allocation2 + $0x170] sm:$0xff] }
  0x7c   :  { %551 = vmatprep.subr.mxu0 %v406_v38  ;;  %622 = vmatprep.subr.mxu1 %v470_v39  ;;  %v503_v37 = vld [vmem:[#allocation2 + $0x370] sm:$0xff]  ;;  %v438_v38 = vld [vmem:[#allocation2 + $0x168] sm:$0xff] }
  0x7d   :  { %552 = vmatpush1.msra.mxu0 %v405_v40  ;;  %623 = vmatpush1.msra.mxu1 %v469_v41  ;;  %v502_v39 = vld [vmem:[#allocation2 + $0x368] sm:$0xff]  ;;  %v437_v40 = vld [vmem:[#allocation2 + $0x160] sm:$0xff] }
  0x7e   :  { %553 = vmatprep.subr.mxu0 %v404_v42  ;;  %624 = vmatprep.subr.mxu1 %v468_v43  ;;  %v501_v41 = vld [vmem:[#allocation2 + $0x360] sm:$0xff]  ;;  %v436_v42 = vld [vmem:[#allocation2 + $0x158] sm:$0xff] }
  0x7f   :  { %554 = vmatpush1.msra.mxu0 %v403_v44  ;;  %625 = vmatpush1.msra.mxu1 %v467_v45  ;;  %v500_v43 = vld [vmem:[#allocation2 + $0x358] sm:$0xff]  ;;  %v435_v44 = vld [vmem:[#allocation2 + $0x150] sm:$0xff] }
  0x80   :  { %555 = vmatprep.subr.mxu0 %v402_v46  ;;  %626 = vmatprep.subr.mxu1 %v466_v47  ;;  %v499_v45 = vld [vmem:[#allocation2 + $0x350] sm:$0xff]  ;;  %v434_v46 = vld [vmem:[#allocation2 + $0x148] sm:$0xff] }
  0x81   :  { %556 = vmatpush1.msra.mxu0 %v401_v48  ;;  %627 = vmatpush1.msra.mxu1 %v465_v49  ;;  %v498_v47 = vld [vmem:[#allocation2 + $0x348] sm:$0xff]  ;;  %v433_v48 = vld [vmem:[#allocation2 + $0x140] sm:$0xff] }
  0x82   :  { %557 = vmatprep.subr.mxu0 %v400_v50  ;;  %628 = vmatprep.subr.mxu1 %v464_v51  ;;  %v497_v49 = vld [vmem:[#allocation2 + $0x340] sm:$0xff]  ;;  %v432_v50 = vld [vmem:[#allocation2 + $0x138] sm:$0xff] }
  0x83   :  { %558 = vmatpush1.msra.mxu0 %v399_v52  ;;  %629 = vmatpush1.msra.mxu1 %v463_v53  ;;  %v496_v51 = vld [vmem:[#allocation2 + $0x338] sm:$0xff]  ;;  %v431_v52 = vld [vmem:[#allocation2 + $0x130] sm:$0xff] }
  0x84   :  { %559 = vmatprep.subr.mxu0 %v398_v54  ;;  %630 = vmatprep.subr.mxu1 %v462_v55  ;;  %v495_v53 = vld [vmem:[#allocation2 + $0x330] sm:$0xff]  ;;  %v430_v54 = vld [vmem:[#allocation2 + $0x128] sm:$0xff] }
  0x85   :  { %560 = vmatpush1.msra.mxu0 %v397_v56  ;;  %631 = vmatpush1.msra.mxu1 %v461_v57  ;;  %v494_v55 = vld [vmem:[#allocation2 + $0x328] sm:$0xff]  ;;  %v429_v56 = vld [vmem:[#allocation2 + $0x120] sm:$0xff] }
  0x86   :  { %561 = vmatprep.subr.mxu0 %v396_v58  ;;  %632 = vmatprep.subr.mxu1 %v460_v59  ;;  %v493_v57 = vld [vmem:[#allocation2 + $0x320] sm:$0xff]  ;;  %v428_v58 = vld [vmem:[#allocation2 + $0x118] sm:$0xff] }
  0x87   :  { %562 = vmatpush1.msra.mxu0 %v395_v60  ;;  %633 = vmatpush1.msra.mxu1 %v459_v61  ;;  %v492_v59 = vld [vmem:[#allocation2 + $0x318] sm:$0xff]  ;;  %v427_v60 = vld [vmem:[#allocation2 + $0x110] sm:$0xff] }
  0x88   :  { %563 = vmatprep.subr.mxu0 %v394_v62  ;;  %634 = vmatprep.subr.mxu1 %v458_v63  ;;  %v491_v61 = vld [vmem:[#allocation2 + $0x310] sm:$0xff]  ;;  %v426_v62 = vld [vmem:[#allocation2 + $0x108] sm:$0xff] }
  0x89   :  { %564 = vmatpush1.msra.mxu0 %v393_v0  ;;  %635 = vmatpush1.msra.mxu1 %v457_v1  ;;  %v490_v63 = vld [vmem:[#allocation2 + $0x308] sm:$0xff]  ;;  %v425_v0 = vld [vmem:[#allocation2 + $0x100] sm:$0xff] }
  0x8a   :  { %565 = vmatprep.subr.mxu0 %v456_v2  ;;  %636 = vmatprep.subr.mxu1 %v520_v3  ;;  %v489_v1 = vld [vmem:[#allocation2 + $0x300] sm:$0xff]  ;;  %v708_v2 = vld [vmem:[%s2236_s5 + $0xf8] sm:$0xff]  ;;  %v216_v3 = vlaneseq }
  0x8b   :  { %566 = vmatpush2.msra.mxu0 %v455_v4  ;;  %637 = vmatpush2.msra.mxu1 %v519_v5 }
  0x8c   :  { %567 = vmatprep.subr.mxu0 %v454_v6  ;;  %638 = vmatprep.subr.mxu1 %v518_v7  ;;  %v2065_v4 = vshrl.u32 %v216_v3, 7  ;;  %v214_v7 = vld [vmem:[%s2233_s2] sm:$0xf] }
  0x8d   :  { %568 = vmatpush2.msra.mxu0 %v453_v8  ;;  %639 = vmatpush2.msra.mxu1 %v517_v9 }
  0x8e   :  { %569 = vmatprep.subr.mxu0 %v452_v10  ;;  %640 = vmatprep.subr.mxu1 %v516_v11  ;;  %v226_v5 = vsub.s32 2, %v2065_v4  ;;  %v2069_v6 = vsub.s32 0, %v2065_v4  ;;  %v2075_v8 = vsub.s32 1, %v2065_v4  ;;  %v230_v9 = vsub.s32 3, %v2065_v4  ;;  %v1305_v4 = vld [vmem:[%s2243_s12] sm:$0x3] }
  0x8f   :  { %570 = vmatpush2.msra.mxu0 %v451_v12  ;;  %641 = vmatpush2.msra.mxu1 %v515_v13 }
  0x90   :  { %571 = vmatprep.subr.mxu0 %v450_v14  ;;  %642 = vmatprep.subr.mxu1 %v514_v15  ;;  %v227_v10 = vrot.slane %v214_v7, %v226_v5  ;;  %v219_v11 = vrot.slane %v214_v7, %v2069_v6  ;;  %v223_v12 = vrot.slane %v214_v7, %v2075_v8 }
  0x91   :  { %572 = vmatpush2.msra.mxu0 %v449_v16  ;;  %643 = vmatpush2.msra.mxu1 %v513_v17  ;;  %v231_v13 = vrot.slane %v214_v7, %v230_v9 }
  0x92   :  { %573 = vmatprep.subr.mxu0 %v448_v18  ;;  %644 = vmatprep.subr.mxu1 %v512_v19 }
  0x93   :  { %574 = vmatpush2.msra.mxu0 %v447_v20  ;;  %645 = vmatpush2.msra.mxu1 %v511_v21 }
  0x94   :  { %575 = vmatprep.subr.mxu0 %v446_v22  ;;  %646 = vmatprep.subr.mxu1 %v510_v23 }
  0x95   :  { %576 = vmatpush2.msra.mxu0 %v445_v24  ;;  %647 = vmatpush2.msra.mxu1 %v509_v25 }
  0x96   :  { %577 = vmatprep.subr.mxu0 %v444_v26  ;;  %648 = vmatprep.subr.mxu1 %v508_v27  ;;  %v692_v26 = vld [vmem:[%s2236_s5 + $0x78] sm:$0xff]  ;;  %v707_v27 = vld [vmem:[%s2236_s5 + $0xf0] sm:$0xff] }
  0x97   :  { %578 = vmatpush2.msra.mxu0 %v443_v28  ;;  %649 = vmatpush2.msra.mxu1 %v507_v29  ;;  %v691_v28 = vld [vmem:[%s2236_s5 + $0x70] sm:$0xff]  ;;  %v706_v29 = vld [vmem:[%s2236_s5 + $0xe8] sm:$0xff] }
  0x98   :  { %579 = vmatprep.subr.mxu0 %v442_v30  ;;  %650 = vmatprep.subr.mxu1 %v506_v31  ;;  %v690_v30 = vld [vmem:[%s2236_s5 + $0x68] sm:$0xff]  ;;  %v705_v31 = vld [vmem:[%s2236_s5 + $0xe0] sm:$0xff] }
  0x99   :  { %580 = vmatpush2.msra.mxu0 %v441_v32  ;;  %651 = vmatpush2.msra.mxu1 %v505_v33  ;;  %v689_v32 = vld [vmem:[%s2236_s5 + $0x60] sm:$0xff]  ;;  %v704_v33 = vld [vmem:[%s2236_s5 + $0xd8] sm:$0xff] }
  0x9a   :  { %581 = vmatprep.subr.mxu0 %v440_v34  ;;  %652 = vmatprep.subr.mxu1 %v504_v35  ;;  %v688_v34 = vld [vmem:[%s2236_s5 + $0x58] sm:$0xff]  ;;  %v703_v35 = vld [vmem:[%s2236_s5 + $0xd0] sm:$0xff] }
  0x9b   :  { %582 = vmatpush2.msra.mxu0 %v439_v36  ;;  %653 = vmatpush2.msra.mxu1 %v503_v37  ;;  %v687_v36 = vld [vmem:[%s2236_s5 + $0x50] sm:$0xff]  ;;  %v702_v37 = vld [vmem:[%s2236_s5 + $0xc8] sm:$0xff] }
  0x9c   :  { %583 = vmatprep.subr.mxu0 %v438_v38  ;;  %654 = vmatprep.subr.mxu1 %v502_v39  ;;  %v686_v38 = vld [vmem:[%s2236_s5 + $0x48] sm:$0xff]  ;;  %v701_v39 = vld [vmem:[%s2236_s5 + $0xc0] sm:$0xff] }
  0x9d   :  { %584 = vmatpush2.msra.mxu0 %v437_v40  ;;  %655 = vmatpush2.msra.mxu1 %v501_v41  ;;  %v685_v40 = vld [vmem:[%s2236_s5 + $0x40] sm:$0xff]  ;;  %v700_v41 = vld [vmem:[%s2236_s5 + $0xb8] sm:$0xff] }
  0x9e   :  { %585 = vmatprep.subr.mxu0 %v436_v42  ;;  %656 = vmatprep.subr.mxu1 %v500_v43  ;;  %v684_v42 = vld [vmem:[%s2236_s5 + $0x38] sm:$0xff]  ;;  %v699_v43 = vld [vmem:[%s2236_s5 + $0xb0] sm:$0xff] }
  0x9f   :  { %586 = vmatpush2.msra.mxu0 %v435_v44  ;;  %657 = vmatpush2.msra.mxu1 %v499_v45  ;;  %v683_v44 = vld [vmem:[%s2236_s5 + $0x30] sm:$0xff]  ;;  %v698_v45 = vld [vmem:[%s2236_s5 + $0xa8] sm:$0xff] }
  0xa0   :  { %587 = vmatprep.subr.mxu0 %v434_v46  ;;  %658 = vmatprep.subr.mxu1 %v498_v47  ;;  %v682_v46 = vld [vmem:[%s2236_s5 + $0x28] sm:$0xff]  ;;  %v697_v47 = vld [vmem:[%s2236_s5 + $0xa0] sm:$0xff] }
  0xa1   :  { %588 = vmatpush2.msra.mxu0 %v433_v48  ;;  %659 = vmatpush2.msra.mxu1 %v497_v49  ;;  %v681_v48 = vld [vmem:[%s2236_s5 + $0x20] sm:$0xff]  ;;  %v696_v49 = vld [vmem:[%s2236_s5 + $0x98] sm:$0xff] }
  0xa2   :  { %589 = vmatprep.subr.mxu0 %v432_v50  ;;  %660 = vmatprep.subr.mxu1 %v496_v51  ;;  %v680_v50 = vld [vmem:[%s2236_s5 + $0x18] sm:$0xff]  ;;  %v695_v51 = vld [vmem:[%s2236_s5 + $0x90] sm:$0xff] }
  0xa3   :  { %590 = vmatpush2.msra.mxu0 %v431_v52  ;;  %661 = vmatpush2.msra.mxu1 %v495_v53  ;;  %v679_v52 = vld [vmem:[%s2236_s5 + $0x10] sm:$0xff]  ;;  %v694_v53 = vld [vmem:[%s2236_s5 + $0x88] sm:$0xff] }
  0xa4   :  { %591 = vmatprep.subr.mxu0 %v430_v54  ;;  %662 = vmatprep.subr.mxu1 %v494_v55  ;;  %v678_v54 = vld [vmem:[%s2236_s5 + $0x8] sm:$0xff]  ;;  %v693_v55 = vld [vmem:[%s2236_s5 + $0x80] sm:$0xff] }
  0xa5   :  { %592 = vmatpush2.msra.mxu0 %v429_v56  ;;  %663 = vmatpush2.msra.mxu1 %v493_v57  ;;  %v677_v56 = vld [vmem:[%s2236_s5] sm:$0xff]  ;;  %v793_v57 = vld [vmem:[%s2238_s7 + $0x38] sm:$0xff] }
  0xa6   :  { %593 = vmatprep.subr.mxu0 %v428_v58  ;;  %664 = vmatprep.subr.mxu1 %v492_v59  ;;  %v521_v58 = vld [vmem:[%s2235_s4] sm:$0x3] }
  0xa7   :  { %594 = vmatpush2.msra.mxu0 %v427_v60  ;;  %665 = vmatpush2.msra.mxu1 %v491_v61  ;;  %v526_v59 = vrot.slane %v521_v58, %v2069_v6  ;;  %v530_v60 = vrot.slane %v521_v58, %v2075_v8  ;;  %v999_v58 = vld [vmem:[#allocation4 + $0x3b0] sm:$0xff] }
  0xa8   :  { %595 = vmatprep.subr.mxu0 %v426_v62  ;;  %666 = vmatprep.subr.mxu1 %v490_v63 }
  0xa9   :  { %596 = vmatpush2.msra.mxu0 %v425_v0  ;;  %667 = vmatpush2.msra.mxu1 %v489_v1 }
  0xaa   :  { %1481 = vmatprep.subr.mxu0 %v708_v2  ;;  %834 = vmatprep.subr.mxu1 %v793_v57  ;;  %v1000_v57 = vld [vmem:[#allocation4 + $0x3b8] sm:$0xff] }
 0x129   :  { %v313_v14 = vpop.f32.mrf.mxu0  ;;  %v384_v15 = vpop.f32.mrf.mxu1 }
 0x12a   :  { %v385_v16 = vadd.f32 %v384_v15, %v227_v10  ;;  %v314_v17 = vadd.f32 %v313_v14, %v219_v11  ;;  %v790_v14 = vld [vmem:[%s2238_s7 + $0x20] sm:$0xff]  ;;  %v789_v15 = vld [vmem:[%s2238_s7 + $0x18] sm:$0xff] }
 0x12b   :  { %v315_v18 = vpop.f32.mrf.mxu0  ;;  %v386_v19 = vpop.f32.mrf.mxu1 }
 0x12c   :  { %v316_v20 = vadd.f32 %v315_v18, %v223_v12  ;;  %v387_v21 = vadd.f32 %v386_v19, %v231_v13  ;;  %v391_v22 = vmax.f32 %v385_v16, 0.0  ;;  %v389_v25 = vmax.f32 %v314_v17, 0.0  ;;  %v792_v12 = vld [vmem:[%s2238_s7 + $0x30] sm:$0xff]  ;;  %v791_v13 = vld [vmem:[%s2238_s7 + $0x28] sm:$0xff]  ;;  %v786_v18 = vld [vmem:[%s2238_s7] sm:$0xff] }
 0x12d   :  { %v788_v16 = vld [vmem:[%s2238_s7 + $0x10] sm:$0xff]  ;;  %v787_v17 = vld [vmem:[%s2238_s7 + $0x8] sm:$0xff]  ;;  %v1595_v19 = vmov 0.0  }
 0x12e   :  { %v390_v23 = vmax.f32 %v316_v20, 0.0  ;;  %v392_v24 = vmax.f32 %v387_v21, 0.0  ;;  %v942_v20 = vld [vmem:[#allocation4 + $0x1e8] sm:$0xff]  ;;  %v944_v21 = vld [vmem:[#allocation4 + $0x1f8] sm:$0xff] }
 0x130   :  { %597 = vmatprep.mubr.f32.mxu0 %v390_v23  ;;  %668 = vmatprep.mubr.f32.mxu1 %v392_v24  ;;  %v940_v23 = vld [vmem:[#allocation4 + $0x1d8] sm:$0xff]  ;;  %v939_v24 = vld [vmem:[#allocation4 + $0x1d0] sm:$0xff] }
 0x131   :  { %598 = vmatmul.mubr.f32.vlgmr.msra.gmra.mxu0 %v389_v25  ;;  %669 = vmatmul.mubr.f32.vlgmr.msra.gmra.mxu1 %v391_v22  ;;  %v943_v22 = vld [vmem:[#allocation4 + $0x1f0] sm:$0xff]  ;;  %v936_v25 = vld [vmem:[#allocation4 + $0x1b8] sm:$0xff] }
 0x132   :  { %1482 = vmatpush3.msra.mxu0 %v692_v26  ;;  %835 = vmatpush1.msra.mxu1 %v792_v12  ;;  %v935_v26 = vld [vmem:[#allocation4 + $0x1b0] sm:$0xff]  ;;  %v972_v12 = vld [vmem:[#allocation4 + $0x2d8] sm:$0xff] }
 0x133   :  { %1483 = vmatprep.subr.mxu0 %v707_v27  ;;  %836 = vmatprep.subr.mxu1 %v791_v13  ;;  %v932_v27 = vld [vmem:[#allocation4 + $0x198] sm:$0xff]  ;;  %v971_v13 = vld [vmem:[#allocation4 + $0x2d0] sm:$0xff] }
 0x134   :  { %1484 = vmatpush3.msra.mxu0 %v691_v28  ;;  %837 = vmatpush1.msra.mxu1 %v790_v14  ;;  %v931_v28 = vld [vmem:[#allocation4 + $0x190] sm:$0xff]  ;;  %v968_v14 = vld [vmem:[#allocation4 + $0x2b8] sm:$0xff] }
 0x135   :  { %1485 = vmatprep.subr.mxu0 %v706_v29  ;;  %838 = vmatprep.subr.mxu1 %v789_v15  ;;  %v928_v29 = vld [vmem:[#allocation4 + $0x178] sm:$0xff]  ;;  %v967_v15 = vld [vmem:[#allocation4 + $0x2b0] sm:$0xff] }
 0x136   :  { %1486 = vmatpush3.msra.mxu0 %v690_v30  ;;  %839 = vmatpush1.msra.mxu1 %v788_v16  ;;  %v927_v30 = vld [vmem:[#allocation4 + $0x170] sm:$0xff]  ;;  %v964_v16 = vld [vmem:[#allocation4 + $0x298] sm:$0xff] }
 0x137   :  { %1487 = vmatprep.subr.mxu0 %v705_v31  ;;  %840 = vmatprep.subr.mxu1 %v787_v17  ;;  %v924_v31 = vld [vmem:[#allocation4 + $0x158] sm:$0xff]  ;;  %v963_v17 = vld [vmem:[#allocation4 + $0x290] sm:$0xff] }
 0x138   :  { %1488 = vmatpush3.msra.mxu0 %v689_v32  ;;  %841 = vmatpush1.msra.mxu1 %v786_v18  ;;  %v923_v32 = vld [vmem:[#allocation4 + $0x150] sm:$0xff]  ;;  %v960_v18 = vld [vmem:[#allocation4 + $0x278] sm:$0xff] }
 0x139   :  { %1489 = vmatprep.subr.mxu0 %v704_v33  ;;  %874 = vmatprep.mubr.f32.mxu1 %v1595_v19  ;;  %v920_v33 = vld [vmem:[#allocation4 + $0x138] sm:$0xff]  ;;  %v959_v19 = vld [vmem:[#allocation4 + $0x270] sm:$0xff] }
 0x13a   :  { %1490 = vmatpush3.msra.mxu0 %v688_v34  ;;  %1031 = vmatprep.subr.mxu1 %v942_v20  ;;  %v919_v34 = vld [vmem:[#allocation4 + $0x130] sm:$0xff] }
 0x13b   :  { %1491 = vmatprep.subr.mxu0 %v703_v35  ;;  %v916_v35 = vld [vmem:[#allocation4 + $0x118] sm:$0xff] }
 0x13c   :  { %1492 = vmatpush3.msra.mxu0 %v687_v36  ;;  %v915_v36 = vld [vmem:[#allocation4 + $0x110] sm:$0xff] }
 0x13d   :  { %1493 = vmatprep.subr.mxu0 %v702_v37  ;;  %v912_v37 = vld [vmem:[#allocation4 + $0xf8] sm:$0xff] }
 0x13e   :  { %1494 = vmatpush3.msra.mxu0 %v686_v38  ;;  %v911_v38 = vld [vmem:[#allocation4 + $0xf0] sm:$0xff] }
 0x13f   :  { %1495 = vmatprep.subr.mxu0 %v701_v39  ;;  %v908_v39 = vld [vmem:[#allocation4 + $0xd8] sm:$0xff] }
 0x140   :  { %1496 = vmatpush3.msra.mxu0 %v685_v40  ;;  %v907_v40 = vld [vmem:[#allocation4 + $0xd0] sm:$0xff] }
 0x141   :  { %1497 = vmatprep.subr.mxu0 %v700_v41  ;;  %v904_v41 = vld [vmem:[#allocation4 + $0xb8] sm:$0xff] }
 0x142   :  { %1498 = vmatpush3.msra.mxu0 %v684_v42  ;;  %v903_v42 = vld [vmem:[#allocation4 + $0xb0] sm:$0xff] }
 0x143   :  { %1499 = vmatprep.subr.mxu0 %v699_v43  ;;  %v900_v43 = vld [vmem:[#allocation4 + $0x98] sm:$0xff] }
 0x144   :  { %1500 = vmatpush3.msra.mxu0 %v683_v44  ;;  %v899_v44 = vld [vmem:[#allocation4 + $0x90] sm:$0xff] }
 0x145   :  { %1501 = vmatprep.subr.mxu0 %v698_v45  ;;  %v896_v45 = vld [vmem:[#allocation4 + $0x78] sm:$0xff] }
 0x146   :  { %1502 = vmatpush3.msra.mxu0 %v682_v46  ;;  %v895_v46 = vld [vmem:[#allocation4 + $0x70] sm:$0xff] }
 0x147   :  { %1503 = vmatprep.subr.mxu0 %v697_v47  ;;  %v892_v47 = vld [vmem:[#allocation4 + $0x58] sm:$0xff] }
 0x148   :  { %1504 = vmatpush3.msra.mxu0 %v681_v48  ;;  %v891_v48 = vld [vmem:[#allocation4 + $0x50] sm:$0xff] }
 0x149   :  { %1505 = vmatprep.subr.mxu0 %v696_v49  ;;  %v888_v49 = vld [vmem:[#allocation4 + $0x38] sm:$0xff] }
 0x14a   :  { %1506 = vmatpush3.msra.mxu0 %v680_v50  ;;  %v887_v50 = vld [vmem:[#allocation4 + $0x30] sm:$0xff] }
 0x14b   :  { %1507 = vmatprep.subr.mxu0 %v695_v51  ;;  %v884_v51 = vld [vmem:[#allocation4 + $0x18] sm:$0xff] }
 0x14c   :  { %1508 = vmatpush3.msra.mxu0 %v679_v52  ;;  %v883_v52 = vld [vmem:[#allocation4 + $0x10] sm:$0xff] }
 0x14d   :  { %1509 = vmatprep.subr.mxu0 %v694_v53  ;;  %v1008_v53 = vld [vmem:[#allocation4 + $0x3f8] sm:$0xff] }
 0x14e   :  { %1510 = vmatpush3.msra.mxu0 %v678_v54  ;;  %v1007_v54 = vld [vmem:[#allocation4 + $0x3f0] sm:$0xff] }
 0x14f   :  { %1511 = vmatprep.subr.mxu0 %v693_v55  ;;  %v1004_v55 = vld [vmem:[#allocation4 + $0x3d8] sm:$0xff] }
 0x150   :  { %1512 = vmatpush3.msra.mxu0 %v677_v56  ;;  %v1003_v56 = vld [vmem:[#allocation4 + $0x3d0] sm:$0xff] }
 0x151   :  { %1102 = vmatprep.subr.mxu0 %v944_v21  ;;  %v1478_v21 = vld [vmem:[%s2237_s6] ss:$0 sm:$0xff] }
 0x1f1   :  { %v599_v61 = vpop.f32.mrf.mxu0  ;;  %v670_v62 = vpop.f32.mrf.mxu1 }
 0x1f2   :  { %v600_v63 = vadd.f32 %v599_v61, %v526_v59  ;;  %v996_v59 = vld [vmem:[#allocation4 + $0x398] sm:$0xff] }
 0x1f3   :  { %v601_v0 = vpop.f32.mrf.mxu0  ;;  %v672_v3 = vpop.f32.mrf.mxu1  ;;  %v992_v61 = vld [vmem:[#allocation4 + $0x378] sm:$0xff] }
 0x1f4   :  { %v602_v1 = vadd.f32 %v601_v0, %v530_v60  ;;  %v671_v2 = vadd.f32 %v670_v62, %v600_v63  ;;  %v995_v60 = vld [vmem:[#allocation4 + $0x390] sm:$0xff]  ;;  %v988_v63 = vld [vmem:[#allocation4 + $0x358] sm:$0xff] }
 0x1f5   :  { %v991_v62 = vld [vmem:[#allocation4 + $0x370] sm:$0xff] }
 0x1f6   :  { %v673_v7 = vadd.f32 %v672_v3, %v602_v1  ;;  %v675_v11 = vmax.f32 %v671_v2, 0.0  ;;  %v987_v0 = vld [vmem:[#allocation4 + $0x350] sm:$0xff]  ;;  %v984_v1 = vld [vmem:[#allocation4 + $0x338] sm:$0xff] }
 0x1f7   :  { %v983_v2 = vld [vmem:[#allocation4 + $0x330] sm:$0xff]  ;;  %v980_v3 = vld [vmem:[#allocation4 + $0x318] sm:$0xff] }
 0x1f8   :  { %v676_v10 = vmax.f32 %v673_v7, 0.0  ;;  %v979_v7 = vld [vmem:[#allocation4 + $0x310] sm:$0xff] }
 0x1fa   :  { %780 = vmatprep.mubr.f32.mxu0 %v676_v10  ;;  %v976_v10 = vld [vmem:[#allocation4 + $0x2f8] sm:$0xff] }
 0x1fb   :  { %781 = vmatmul.mubr.f32.vlgmr.msra.gmra.mxu0 %v675_v11  ;;  %v975_v11 = vld [vmem:[#allocation4 + $0x2f0] sm:$0xff] }
 0x1fc   :  { %1103 = vmatpush1.msra.mxu0 %v943_v22 }
 0x1fd   :  { %1104 = vmatprep.subr.mxu0 %v940_v23 }
 0x1fe   :  { %1105 = vmatpush1.msra.mxu0 %v939_v24 }
 0x1ff   :  { %1106 = vmatprep.subr.mxu0 %v936_v25  ;;  %v941_v25 = vld [vmem:[#allocation4 + $0x1e0] sm:$0xff] }
 0x200   :  { %1107 = vmatpush1.msra.mxu0 %v935_v26  ;;  %v938_v26 = vld [vmem:[#allocation4 + $0x1c8] sm:$0xff] }
 0x201   :  { %1108 = vmatprep.subr.mxu0 %v932_v27  ;;  %v937_v27 = vld [vmem:[#allocation4 + $0x1c0] sm:$0xff] }
 0x202   :  { %1109 = vmatpush1.msra.mxu0 %v931_v28  ;;  %v934_v28 = vld [vmem:[#allocation4 + $0x1a8] sm:$0xff] }
 0x203   :  { %1110 = vmatprep.subr.mxu0 %v928_v29  ;;  %v933_v29 = vld [vmem:[#allocation4 + $0x1a0] sm:$0xff] }
 0x204   :  { %1111 = vmatpush1.msra.mxu0 %v927_v30  ;;  %v930_v30 = vld [vmem:[#allocation4 + $0x188] sm:$0xff] }
 0x205   :  { %1112 = vmatprep.subr.mxu0 %v924_v31  ;;  %v929_v31 = vld [vmem:[#allocation4 + $0x180] sm:$0xff] }
 0x206   :  { %1113 = vmatpush1.msra.mxu0 %v923_v32  ;;  %v926_v32 = vld [vmem:[#allocation4 + $0x168] sm:$0xff] }
 0x207   :  { %1114 = vmatprep.subr.mxu0 %v920_v33  ;;  %v925_v33 = vld [vmem:[#allocation4 + $0x160] sm:$0xff] }
 0x208   :  { %1115 = vmatpush1.msra.mxu0 %v919_v34  ;;  %v922_v34 = vld [vmem:[#allocation4 + $0x148] sm:$0xff] }
 0x209   :  { %1116 = vmatprep.subr.mxu0 %v916_v35  ;;  %v921_v35 = vld [vmem:[#allocation4 + $0x140] sm:$0xff] }
 0x20a   :  { %1117 = vmatpush1.msra.mxu0 %v915_v36  ;;  %v918_v36 = vld [vmem:[#allocation4 + $0x128] sm:$0xff] }
 0x20b   :  { %1118 = vmatprep.subr.mxu0 %v912_v37  ;;  %v917_v37 = vld [vmem:[#allocation4 + $0x120] sm:$0xff] }
 0x20c   :  { %1119 = vmatpush1.msra.mxu0 %v911_v38  ;;  %v914_v38 = vld [vmem:[#allocation4 + $0x108] sm:$0xff] }
 0x20d   :  { %1120 = vmatprep.subr.mxu0 %v908_v39  ;;  %v913_v39 = vld [vmem:[#allocation4 + $0x100] sm:$0xff] }
 0x20e   :  { %1121 = vmatpush1.msra.mxu0 %v907_v40  ;;  %v910_v40 = vld [vmem:[#allocation4 + $0xe8] sm:$0xff] }
 0x20f   :  { %1122 = vmatprep.subr.mxu0 %v904_v41  ;;  %v909_v41 = vld [vmem:[#allocation4 + $0xe0] sm:$0xff] }
 0x210   :  { %1123 = vmatpush1.msra.mxu0 %v903_v42  ;;  %v906_v42 = vld [vmem:[#allocation4 + $0xc8] sm:$0xff] }
 0x211   :  { %1124 = vmatprep.subr.mxu0 %v900_v43  ;;  %v905_v43 = vld [vmem:[#allocation4 + $0xc0] sm:$0xff] }
 0x212   :  { %1125 = vmatpush1.msra.mxu0 %v899_v44  ;;  %v902_v44 = vld [vmem:[#allocation4 + $0xa8] sm:$0xff] }
 0x213   :  { %1126 = vmatprep.subr.mxu0 %v896_v45  ;;  %v901_v45 = vld [vmem:[#allocation4 + $0xa0] sm:$0xff] }
 0x214   :  { %1127 = vmatpush1.msra.mxu0 %v895_v46  ;;  %v898_v46 = vld [vmem:[#allocation4 + $0x88] sm:$0xff] }
 0x215   :  { %1128 = vmatprep.subr.mxu0 %v892_v47  ;;  %v897_v47 = vld [vmem:[#allocation4 + $0x80] sm:$0xff] }
 0x216   :  { %1129 = vmatpush1.msra.mxu0 %v891_v48  ;;  %v894_v48 = vld [vmem:[#allocation4 + $0x68] sm:$0xff] }
 0x217   :  { %1130 = vmatprep.subr.mxu0 %v888_v49  ;;  %v893_v49 = vld [vmem:[#allocation4 + $0x60] sm:$0xff] }
 0x218   :  { %1131 = vmatpush1.msra.mxu0 %v887_v50  ;;  %v890_v50 = vld [vmem:[#allocation4 + $0x48] sm:$0xff] }
 0x219   :  { %1132 = vmatprep.subr.mxu0 %v884_v51  ;;  %v889_v51 = vld [vmem:[#allocation4 + $0x40] sm:$0xff] }
 0x21a   :  { %1133 = vmatpush1.msra.mxu0 %v883_v52  ;;  %v886_v52 = vld [vmem:[#allocation4 + $0x28] sm:$0xff] }
 0x21b   :  { %1134 = vmatprep.subr.mxu0 %v1008_v53  ;;  %v885_v53 = vld [vmem:[#allocation4 + $0x20] sm:$0xff] }
 0x21c   :  { %1135 = vmatpush2.msra.mxu0 %v1007_v54  ;;  %v882_v54 = vld [vmem:[#allocation4 + $0x8] sm:$0xff] }
 0x21d   :  { %1136 = vmatprep.subr.mxu0 %v1004_v55  ;;  %v881_v55 = vld [vmem:[#allocation4] sm:$0xff] }
 0x21e   :  { %1137 = vmatpush2.msra.mxu0 %v1003_v56  ;;  %v1006_v56 = vld [vmem:[#allocation4 + $0x3e8] sm:$0xff] }
 0x21f   :  { %1138 = vmatprep.subr.mxu0 %v1000_v57  ;;  %v1005_v57 = vld [vmem:[#allocation4 + $0x3e0] sm:$0xff] }
 0x220   :  { %1139 = vmatpush2.msra.mxu0 %v999_v58  ;;  %v1002_v58 = vld [vmem:[#allocation4 + $0x3c8] sm:$0xff] }
 0x221   :  { %1140 = vmatprep.subr.mxu0 %v996_v59  ;;  %v1001_v59 = vld [vmem:[#allocation4 + $0x3c0] sm:$0xff] }
 0x222   :  { %1141 = vmatpush2.msra.mxu0 %v995_v60  ;;  %v998_v60 = vld [vmem:[#allocation4 + $0x3a8] sm:$0xff] }
 0x223   :  { %1142 = vmatprep.subr.mxu0 %v992_v61  ;;  %v997_v61 = vld [vmem:[#allocation4 + $0x3a0] sm:$0xff] }
 0x224   :  { %1143 = vmatpush2.msra.mxu0 %v991_v62  ;;  %v994_v62 = vld [vmem:[#allocation4 + $0x388] sm:$0xff] }
 0x225   :  { %1144 = vmatprep.subr.mxu0 %v988_v63  ;;  %v993_v63 = vld [vmem:[#allocation4 + $0x380] sm:$0xff] }
 0x226   :  { %1145 = vmatpush2.msra.mxu0 %v987_v0  ;;  %v990_v0 = vld [vmem:[#allocation4 + $0x368] sm:$0xff] }
 0x227   :  { %1146 = vmatprep.subr.mxu0 %v984_v1  ;;  %v989_v1 = vld [vmem:[#allocation4 + $0x360] sm:$0xff] }
 0x228   :  { %1147 = vmatpush2.msra.mxu0 %v983_v2  ;;  %v986_v2 = vld [vmem:[#allocation4 + $0x348] sm:$0xff] }
 0x229   :  { %1148 = vmatprep.subr.mxu0 %v980_v3  ;;  %v985_v3 = vld [vmem:[#allocation4 + $0x340] sm:$0xff] }
 0x22a   :  { %1149 = vmatpush2.msra.mxu0 %v979_v7  ;;  %v982_v7 = vld [vmem:[#allocation4 + $0x328] sm:$0xff] }
 0x22b   :  { %1150 = vmatprep.subr.mxu0 %v976_v10  ;;  %v981_v10 = vld [vmem:[#allocation4 + $0x320] sm:$0xff] }
 0x22c   :  { %1151 = vmatpush2.msra.mxu0 %v975_v11  ;;  %v978_v11 = vld [vmem:[#allocation4 + $0x308] sm:$0xff] }
 0x22d   :  { %1152 = vmatprep.subr.mxu0 %v972_v12  ;;  %v977_v12 = vld [vmem:[#allocation4 + $0x300] sm:$0xff] }
 0x22e   :  { %1153 = vmatpush2.msra.mxu0 %v971_v13  ;;  %v974_v13 = vld [vmem:[#allocation4 + $0x2e8] sm:$0xff] }
 0x22f   :  { %1154 = vmatprep.subr.mxu0 %v968_v14  ;;  %v973_v14 = vld [vmem:[#allocation4 + $0x2e0] sm:$0xff] }
 0x230   :  { %1155 = vmatpush2.msra.mxu0 %v967_v15  ;;  %v970_v15 = vld [vmem:[#allocation4 + $0x2c8] sm:$0xff] }
 0x231   :  { %1156 = vmatprep.subr.mxu0 %v964_v16  ;;  %v969_v16 = vld [vmem:[#allocation4 + $0x2c0] sm:$0xff] }
 0x232   :  { %1157 = vmatpush2.msra.mxu0 %v963_v17  ;;  %v966_v17 = vld [vmem:[#allocation4 + $0x2a8] sm:$0xff] }
 0x233   :  { %1158 = vmatprep.subr.mxu0 %v960_v18  ;;  %v965_v18 = vld [vmem:[#allocation4 + $0x2a0] sm:$0xff] }
 0x234   :  { %1159 = vmatpush2.msra.mxu0 %v959_v19  ;;  %v962_v19 = vld [vmem:[#allocation4 + $0x288] sm:$0xff] }
 0x2bb   :  { %v1513_v20 = vpop.f32.mrf.mxu0 }
 0x2bd   :  { %v1514_v22 = vpop.f32.mrf.mxu0 }
 0x2be   :  { %v1515_v23 = vadd.f32 %v1514_v22, %v1513_v20  ;;  %v961_v20 = vld [vmem:[#allocation4 + $0x280] sm:$0xff] }
 0x2bf   :  { %v957_v22 = vld [vmem:[#allocation4 + $0x260] sm:$0xff] }
 0x2c0   :  { %v783_v24 = vadd.f32 %v1515_v23, %v1478_v21  ;;  %v958_v21 = vld [vmem:[#allocation4 + $0x268] sm:$0xff] }
 0x2c1   :  { %v954_v23 = vld [vmem:[#allocation4 + $0x248] sm:$0xff] }
 0x2c2   :  { %1479 = vmatmul.mubr.msk.f32.vlgmr.msra.gmra.mxu1 %vm806_vm0, %v783_v24  ;;  %v956_v24 = vld [vmem:[#allocation4 + $0x258] sm:$0xff] }
 0x2c3   :  { %1032 = vmatpush1.msra.mxu1 %v941_v25  ;;  %1160 = vmatprep.subr.mxu0 %v956_v24  ;;  %v953_v25 = vld [vmem:[#allocation4 + $0x240] sm:$0xff]  ;;  %v1252_v24 = vld [vmem:[#allocation6 + $0x258] sm:$0xff] }
 0x2c4   :  { %1033 = vmatprep.subr.mxu1 %v938_v26  ;;  %v955_v26 = vld [vmem:[#allocation4 + $0x250] sm:$0xff] }
 0x2c5   :  { %1034 = vmatpush1.msra.mxu1 %v937_v27  ;;  %1161 = vmatpush2.msra.mxu0 %v955_v26  ;;  %v950_v27 = vld [vmem:[#allocation4 + $0x228] sm:$0xff]  ;;  %v1251_v26 = vld [vmem:[#allocation6 + $0x250] sm:$0xff] }
 0x2c6   :  { %1035 = vmatprep.subr.mxu1 %v934_v28  ;;  %v952_v28 = vld [vmem:[#allocation4 + $0x238] sm:$0xff] }
 0x2c7   :  { %1036 = vmatpush1.msra.mxu1 %v933_v29  ;;  %1162 = vmatprep.subr.mxu0 %v952_v28  ;;  %v949_v29 = vld [vmem:[#allocation4 + $0x220] sm:$0xff]  ;;  %v1250_v28 = vld [vmem:[#allocation6 + $0x248] sm:$0xff] }
 0x2c8   :  { %1037 = vmatprep.subr.mxu1 %v930_v30  ;;  %v951_v30 = vld [vmem:[#allocation4 + $0x230] sm:$0xff] }
 0x2c9   :  { %1038 = vmatpush1.msra.mxu1 %v929_v31  ;;  %1163 = vmatpush2.msra.mxu0 %v951_v30  ;;  %v946_v31 = vld [vmem:[#allocation4 + $0x208] sm:$0xff]  ;;  %v1249_v30 = vld [vmem:[#allocation6 + $0x240] sm:$0xff] }
 0x2ca   :  { %1039 = vmatprep.subr.mxu1 %v926_v32  ;;  %v948_v32 = vld [vmem:[#allocation4 + $0x218] sm:$0xff] }
 0x2cb   :  { %1040 = vmatpush1.msra.mxu1 %v925_v33  ;;  %v945_v33 = vld [vmem:[#allocation4 + $0x200] sm:$0xff]  ;;  %1164 = vmatprep.subr.mxu0 %v948_v32  ;;  %v1248_v32 = vld [vmem:[#allocation6 + $0x238] sm:$0xff] }
 0x2cc   :  { %1041 = vmatprep.subr.mxu1 %v922_v34  ;;  %v947_v34 = vld [vmem:[#allocation4 + $0x210] sm:$0xff] }
 0x2cd   :  { %1042 = vmatpush1.msra.mxu1 %v921_v35  ;;  %1165 = vmatpush2.msra.mxu0 %v947_v34  ;;  %v1208_v35 = vld [vmem:[#allocation6 + $0xf8] sm:$0xff]  ;;  %v1247_v34 = vld [vmem:[#allocation6 + $0x230] sm:$0xff] }
 0x2ce   :  { %1043 = vmatprep.subr.mxu1 %v918_v36  ;;  %v1272_v36 = vld [vmem:[#allocation6 + $0x2f8] sm:$0xff] }
 0x2cf   :  { %1044 = vmatpush1.msra.mxu1 %v917_v37  ;;  %1388 = vmatprep.subr.mxu0 %v1272_v36  ;;  %v794_v37 = vld [vmem:[%s2239_s8] sm:$0x3]  ;;  %v1246_v36 = vld [vmem:[#allocation6 + $0x228] sm:$0xff] }
 0x2d0   :  { %1045 = vmatprep.subr.mxu1 %v914_v38  ;;  %v803_v38 = vrot.slane %v794_v37, %v2075_v8 }
 0x2d1   :  { %1046 = vmatpush1.msra.mxu1 %v913_v39  ;;  %v799_v39 = vrot.slane %v794_v37, %v2069_v6  ;;  %v1181_v37 = vld [vmem:[#allocation6 + $0x20] sm:$0xff] }
 0x2d2   :  { %1047 = vmatprep.subr.mxu1 %v910_v40 }
 0x2d3   :  { %1048 = vmatpush1.msra.mxu1 %v909_v41 }
 0x2d4   :  { %1049 = vmatprep.subr.mxu1 %v906_v42 }
 0x2d5   :  { %1050 = vmatpush1.msra.mxu1 %v905_v43 }
 0x2d6   :  { %1051 = vmatprep.subr.mxu1 %v902_v44  ;;  %v1207_v44 = vld [vmem:[#allocation6 + $0xf0] sm:$0xff] }
 0x2d7   :  { %1052 = vmatpush1.msra.mxu1 %v901_v45  ;;  %v1271_v45 = vld [vmem:[#allocation6 + $0x2f0] sm:$0xff] }
 0x2d8   :  { %1053 = vmatprep.subr.mxu1 %v898_v46  ;;  %v1206_v46 = vld [vmem:[#allocation6 + $0xe8] sm:$0xff] }
 0x2d9   :  { %1054 = vmatpush1.msra.mxu1 %v897_v47  ;;  %v1270_v47 = vld [vmem:[#allocation6 + $0x2e8] sm:$0xff] }
 0x2da   :  { %1055 = vmatprep.subr.mxu1 %v894_v48  ;;  %v1205_v48 = vld [vmem:[#allocation6 + $0xe0] sm:$0xff] }
 0x2db   :  { %1056 = vmatpush1.msra.mxu1 %v893_v49  ;;  %v1269_v49 = vld [vmem:[#allocation6 + $0x2e0] sm:$0xff] }
 0x2dc   :  { %1057 = vmatprep.subr.mxu1 %v890_v50  ;;  %v1204_v50 = vld [vmem:[#allocation6 + $0xd8] sm:$0xff] }
 0x2dd   :  { %1058 = vmatpush1.msra.mxu1 %v889_v51  ;;  %v1268_v51 = vld [vmem:[#allocation6 + $0x2d8] sm:$0xff] }
 0x2de   :  { %1059 = vmatprep.subr.mxu1 %v886_v52  ;;  %v1203_v52 = vld [vmem:[#allocation6 + $0xd0] sm:$0xff] }
 0x2df   :  { %1060 = vmatpush1.msra.mxu1 %v885_v53  ;;  %v1267_v53 = vld [vmem:[#allocation6 + $0x2d0] sm:$0xff] }
 0x2e0   :  { %1061 = vmatprep.subr.mxu1 %v882_v54  ;;  %v1202_v54 = vld [vmem:[#allocation6 + $0xc8] sm:$0xff] }
 0x2e1   :  { %1062 = vmatpush1.msra.mxu1 %v881_v55  ;;  %v1266_v55 = vld [vmem:[#allocation6 + $0x2c8] sm:$0xff] }
 0x2e2   :  { %1063 = vmatprep.subr.mxu1 %v1006_v56  ;;  %v1201_v56 = vld [vmem:[#allocation6 + $0xc0] sm:$0xff] }
 0x2e3   :  { %1064 = vmatpush2.msra.mxu1 %v1005_v57  ;;  %v1265_v57 = vld [vmem:[#allocation6 + $0x2c0] sm:$0xff] }
 0x2e4   :  { %1065 = vmatprep.subr.mxu1 %v1002_v58  ;;  %v1200_v58 = vld [vmem:[#allocation6 + $0xb8] sm:$0xff] }
 0x2e5   :  { %1066 = vmatpush2.msra.mxu1 %v1001_v59  ;;  %v1264_v59 = vld [vmem:[#allocation6 + $0x2b8] sm:$0xff] }
 0x2e6   :  { %1067 = vmatprep.subr.mxu1 %v998_v60  ;;  %v1199_v60 = vld [vmem:[#allocation6 + $0xb0] sm:$0xff] }
 0x2e7   :  { %1068 = vmatpush2.msra.mxu1 %v997_v61  ;;  %v1263_v61 = vld [vmem:[#allocation6 + $0x2b0] sm:$0xff] }
 0x2e8   :  { %1069 = vmatprep.subr.mxu1 %v994_v62  ;;  %v1198_v62 = vld [vmem:[#allocation6 + $0xa8] sm:$0xff] }
 0x2e9   :  { %1070 = vmatpush2.msra.mxu1 %v993_v63  ;;  %v1262_v63 = vld [vmem:[#allocation6 + $0x2a8] sm:$0xff] }
 0x2ea   :  { %1071 = vmatprep.subr.mxu1 %v990_v0  ;;  %v1197_v0 = vld [vmem:[#allocation6 + $0xa0] sm:$0xff] }
 0x2eb   :  { %1072 = vmatpush2.msra.mxu1 %v989_v1  ;;  %v1261_v1 = vld [vmem:[#allocation6 + $0x2a0] sm:$0xff] }
 0x2ec   :  { %1073 = vmatprep.subr.mxu1 %v986_v2  ;;  %v1196_v2 = vld [vmem:[#allocation6 + $0x98] sm:$0xff] }
 0x2ed   :  { %1074 = vmatpush2.msra.mxu1 %v985_v3  ;;  %v1260_v3 = vld [vmem:[#allocation6 + $0x298] sm:$0xff] }
 0x2ee   :  { %1075 = vmatprep.subr.mxu1 %v982_v7  ;;  %v1195_v7 = vld [vmem:[#allocation6 + $0x90] sm:$0xff] }
 0x2ef   :  { %1076 = vmatpush2.msra.mxu1 %v981_v10  ;;  %v1259_v10 = vld [vmem:[#allocation6 + $0x290] sm:$0xff] }
 0x2f0   :  { %1077 = vmatprep.subr.mxu1 %v978_v11  ;;  %v1194_v11 = vld [vmem:[#allocation6 + $0x88] sm:$0xff] }
 0x2f1   :  { %1078 = vmatpush2.msra.mxu1 %v977_v12  ;;  %v1258_v12 = vld [vmem:[#allocation6 + $0x288] sm:$0xff] }
 0x2f2   :  { %1079 = vmatprep.subr.mxu1 %v974_v13  ;;  %v1193_v13 = vld [vmem:[#allocation6 + $0x80] sm:$0xff] }
 0x2f3   :  { %1080 = vmatpush2.msra.mxu1 %v973_v14  ;;  %v1257_v14 = vld [vmem:[#allocation6 + $0x280] sm:$0xff] }
 0x2f4   :  { %1081 = vmatprep.subr.mxu1 %v970_v15  ;;  %v1192_v15 = vld [vmem:[#allocation6 + $0x78] sm:$0xff] }
 0x2f5   :  { %1082 = vmatpush2.msra.mxu1 %v969_v16  ;;  %v1256_v16 = vld [vmem:[#allocation6 + $0x278] sm:$0xff] }
 0x2f6   :  { %1083 = vmatprep.subr.mxu1 %v966_v17  ;;  %v1191_v17 = vld [vmem:[#allocation6 + $0x70] sm:$0xff] }
 0x2f7   :  { %1084 = vmatpush2.msra.mxu1 %v965_v18  ;;  %v1255_v18 = vld [vmem:[#allocation6 + $0x270] sm:$0xff] }
 0x2f8   :  { %1085 = vmatprep.subr.mxu1 %v962_v19  ;;  %v1190_v19 = vld [vmem:[#allocation6 + $0x68] sm:$0xff] }
 0x2f9   :  { %1086 = vmatpush2.msra.mxu1 %v961_v20  ;;  %v1254_v20 = vld [vmem:[#allocation6 + $0x268] sm:$0xff] }
 0x2fa   :  { %1087 = vmatprep.subr.mxu1 %v958_v21  ;;  %v1189_v21 = vld [vmem:[#allocation6 + $0x60] sm:$0xff] }
 0x2fb   :  { %1088 = vmatpush2.msra.mxu1 %v957_v22  ;;  %v1253_v22 = vld [vmem:[#allocation6 + $0x260] sm:$0xff] }
 0x2fc   :  { %1089 = vmatprep.subr.mxu1 %v954_v23  ;;  %v1188_v23 = vld [vmem:[#allocation6 + $0x58] sm:$0xff] }
 0x2fd   :  { %1090 = vmatpush2.msra.mxu1 %v953_v25  ;;  %v1187_v25 = vld [vmem:[#allocation6 + $0x50] sm:$0xff] }
 0x2fe   :  { %1091 = vmatprep.subr.mxu1 %v950_v27  ;;  %v1186_v27 = vld [vmem:[#allocation6 + $0x48] sm:$0xff] }
 0x2ff   :  { %1092 = vmatpush2.msra.mxu1 %v949_v29  ;;  %v1185_v29 = vld [vmem:[#allocation6 + $0x40] sm:$0xff] }
 0x300   :  { %1093 = vmatprep.subr.mxu1 %v946_v31  ;;  %v1184_v31 = vld [vmem:[#allocation6 + $0x38] sm:$0xff] }
 0x301   :  { %1094 = vmatpush2.msra.mxu1 %v945_v33  ;;  %v1183_v33 = vld [vmem:[#allocation6 + $0x30] sm:$0xff] }
 0x302   :  { %1317 = vmatprep.subr.mxu1 %v1208_v35  ;;  %v1182_v35 = vld [vmem:[#allocation6 + $0x28] sm:$0xff] }
 0x382   :  { %v876_v40 = vpop.f32.mrf.mxu1 }
 0x383   :  { %v877_v43 = vadd.f32 %v876_v40, %v799_v39  ;;  %v1180_v39 = vld [vmem:[#allocation6 + $0x18] sm:$0xff] }
 0x384   :  { %v878_v41 = vpop.f32.mrf.mxu1  ;;  %v1244_v40 = vld [vmem:[#allocation6 + $0x218] sm:$0xff] }
 0x385   :  { %v879_v42 = vadd.f32 %v878_v41, %v803_v38  ;;  %v1245_v38 = vld [vmem:[#allocation6 + $0x220] sm:$0xff]  ;;  %v1179_v41 = vld [vmem:[#allocation6 + $0x10] sm:$0xff] }
 0x387   :  { %1095 = vmatprep.mubr.f32.mxu1 %v879_v42  ;;  %1166 = vmatprep.mubr.f32.mxu0 %v879_v42  ;;  %v1243_v42 = vld [vmem:[#allocation6 + $0x210] sm:$0xff] }
 0x388   :  { %1096 = vmatmul.mubr.f32.vlgmr.msra.gmra.mxu1 %v877_v43  ;;  %1167 = vmatmul.mubr.f32.vlgmr.msra.gmra.mxu0 %v877_v43  ;;  %v1178_v43 = vld [vmem:[#allocation6 + $0x8] sm:$0xff] }
 0x389   :  { %1318 = vmatpush1.msra.mxu1 %v1207_v44  ;;  %1389 = vmatpush1.msra.mxu0 %v1271_v45  ;;  %v1242_v44 = vld [vmem:[#allocation6 + $0x208] sm:$0xff]  ;;  %v1177_v45 = vld [vmem:[#allocation6] sm:$0xff] }
 0x38a   :  { %1319 = vmatprep.subr.mxu1 %v1206_v46  ;;  %1390 = vmatprep.subr.mxu0 %v1270_v47  ;;  %v1241_v46 = vld [vmem:[#allocation6 + $0x200] sm:$0xff]  ;;  %v1240_v47 = vld [vmem:[#allocation6 + $0x1f8] sm:$0xff] }
 0x38b   :  { %1320 = vmatpush1.msra.mxu1 %v1205_v48  ;;  %1391 = vmatpush1.msra.mxu0 %v1269_v49  ;;  %v1304_v48 = vld [vmem:[#allocation6 + $0x3f8] sm:$0xff]  ;;  %v1239_v49 = vld [vmem:[#allocation6 + $0x1f0] sm:$0xff] }
 0x38c   :  { %1321 = vmatprep.subr.mxu1 %v1204_v50  ;;  %1392 = vmatprep.subr.mxu0 %v1268_v51  ;;  %v1303_v50 = vld [vmem:[#allocation6 + $0x3f0] sm:$0xff]  ;;  %v1238_v51 = vld [vmem:[#allocation6 + $0x1e8] sm:$0xff] }
 0x38d   :  { %1322 = vmatpush1.msra.mxu1 %v1203_v52  ;;  %1393 = vmatpush1.msra.mxu0 %v1267_v53  ;;  %v1302_v52 = vld [vmem:[#allocation6 + $0x3e8] sm:$0xff]  ;;  %v1237_v53 = vld [vmem:[#allocation6 + $0x1e0] sm:$0xff] }
 0x38e   :  { %1323 = vmatprep.subr.mxu1 %v1202_v54  ;;  %1394 = vmatprep.subr.mxu0 %v1266_v55  ;;  %v1301_v54 = vld [vmem:[#allocation6 + $0x3e0] sm:$0xff]  ;;  %v1236_v55 = vld [vmem:[#allocation6 + $0x1d8] sm:$0xff] }
 0x38f   :  { %1324 = vmatpush1.msra.mxu1 %v1201_v56  ;;  %1395 = vmatpush1.msra.mxu0 %v1265_v57  ;;  %v1300_v56 = vld [vmem:[#allocation6 + $0x3d8] sm:$0xff]  ;;  %v1235_v57 = vld [vmem:[#allocation6 + $0x1d0] sm:$0xff] }
 0x390   :  { %1325 = vmatprep.subr.mxu1 %v1200_v58  ;;  %1396 = vmatprep.subr.mxu0 %v1264_v59  ;;  %v1299_v58 = vld [vmem:[#allocation6 + $0x3d0] sm:$0xff]  ;;  %v1234_v59 = vld [vmem:[#allocation6 + $0x1c8] sm:$0xff] }
 0x391   :  { %1326 = vmatpush1.msra.mxu1 %v1199_v60  ;;  %1397 = vmatpush1.msra.mxu0 %v1263_v61  ;;  %v1298_v60 = vld [vmem:[#allocation6 + $0x3c8] sm:$0xff]  ;;  %v1233_v61 = vld [vmem:[#allocation6 + $0x1c0] sm:$0xff] }
 0x392   :  { %1327 = vmatprep.subr.mxu1 %v1198_v62  ;;  %1398 = vmatprep.subr.mxu0 %v1262_v63  ;;  %v1297_v62 = vld [vmem:[#allocation6 + $0x3c0] sm:$0xff]  ;;  %v1232_v63 = vld [vmem:[#allocation6 + $0x1b8] sm:$0xff] }
 0x393   :  { %1328 = vmatpush1.msra.mxu1 %v1197_v0  ;;  %1399 = vmatpush1.msra.mxu0 %v1261_v1  ;;  %v1296_v0 = vld [vmem:[#allocation6 + $0x3b8] sm:$0xff]  ;;  %v1231_v1 = vld [vmem:[#allocation6 + $0x1b0] sm:$0xff] }
 0x394   :  { %1329 = vmatprep.subr.mxu1 %v1196_v2  ;;  %1400 = vmatprep.subr.mxu0 %v1260_v3  ;;  %v1295_v2 = vld [vmem:[#allocation6 + $0x3b0] sm:$0xff]  ;;  %v1230_v3 = vld [vmem:[#allocation6 + $0x1a8] sm:$0xff] }
 0x395   :  { %1330 = vmatpush1.msra.mxu1 %v1195_v7  ;;  %1401 = vmatpush1.msra.mxu0 %v1259_v10  ;;  %v1294_v7 = vld [vmem:[#allocation6 + $0x3a8] sm:$0xff]  ;;  %v1229_v10 = vld [vmem:[#allocation6 + $0x1a0] sm:$0xff] }
 0x396   :  { %1331 = vmatprep.subr.mxu1 %v1194_v11  ;;  %1402 = vmatprep.subr.mxu0 %v1258_v12  ;;  %v1293_v11 = vld [vmem:[#allocation6 + $0x3a0] sm:$0xff]  ;;  %v1228_v12 = vld [vmem:[#allocation6 + $0x198] sm:$0xff] }
 0x397   :  { %1332 = vmatpush1.msra.mxu1 %v1193_v13  ;;  %1403 = vmatpush1.msra.mxu0 %v1257_v14  ;;  %v1292_v13 = vld [vmem:[#allocation6 + $0x398] sm:$0xff]  ;;  %v1227_v14 = vld [vmem:[#allocation6 + $0x190] sm:$0xff] }
 0x398   :  { %1333 = vmatprep.subr.mxu1 %v1192_v15  ;;  %1404 = vmatprep.subr.mxu0 %v1256_v16  ;;  %v1291_v15 = vld [vmem:[#allocation6 + $0x390] sm:$0xff]  ;;  %v1226_v16 = vld [vmem:[#allocation6 + $0x188] sm:$0xff] }
 0x399   :  { %1334 = vmatpush1.msra.mxu1 %v1191_v17  ;;  %1405 = vmatpush1.msra.mxu0 %v1255_v18  ;;  %v1290_v17 = vld [vmem:[#allocation6 + $0x388] sm:$0xff]  ;;  %v1225_v18 = vld [vmem:[#allocation6 + $0x180] sm:$0xff] }
 0x39a   :  { %1335 = vmatprep.subr.mxu1 %v1190_v19  ;;  %1406 = vmatprep.subr.mxu0 %v1254_v20  ;;  %v1289_v19 = vld [vmem:[#allocation6 + $0x380] sm:$0xff]  ;;  %v1224_v20 = vld [vmem:[#allocation6 + $0x178] sm:$0xff] }
 0x39b   :  { %1336 = vmatpush1.msra.mxu1 %v1189_v21  ;;  %1407 = vmatpush1.msra.mxu0 %v1253_v22  ;;  %v1288_v21 = vld [vmem:[#allocation6 + $0x378] sm:$0xff]  ;;  %v1223_v22 = vld [vmem:[#allocation6 + $0x170] sm:$0xff] }
 0x39c   :  { %1337 = vmatprep.subr.mxu1 %v1188_v23  ;;  %1408 = vmatprep.subr.mxu0 %v1252_v24  ;;  %v1287_v23 = vld [vmem:[#allocation6 + $0x370] sm:$0xff]  ;;  %v1222_v24 = vld [vmem:[#allocation6 + $0x168] sm:$0xff] }
 0x39d   :  { %1338 = vmatpush1.msra.mxu1 %v1187_v25  ;;  %1409 = vmatpush1.msra.mxu0 %v1251_v26  ;;  %v1286_v25 = vld [vmem:[#allocation6 + $0x368] sm:$0xff]  ;;  %v1221_v26 = vld [vmem:[#allocation6 + $0x160] sm:$0xff] }
 0x39e   :  { %1339 = vmatprep.subr.mxu1 %v1186_v27  ;;  %1410 = vmatprep.subr.mxu0 %v1250_v28  ;;  %v1285_v27 = vld [vmem:[#allocation6 + $0x360] sm:$0xff]  ;;  %v1220_v28 = vld [vmem:[#allocation6 + $0x158] sm:$0xff] }
 0x39f   :  { %1340 = vmatpush1.msra.mxu1 %v1185_v29  ;;  %1411 = vmatpush1.msra.mxu0 %v1249_v30  ;;  %v1284_v29 = vld [vmem:[#allocation6 + $0x358] sm:$0xff]  ;;  %v1219_v30 = vld [vmem:[#allocation6 + $0x150] sm:$0xff] }
 0x3a0   :  { %1341 = vmatprep.subr.mxu1 %v1184_v31  ;;  %1412 = vmatprep.subr.mxu0 %v1248_v32  ;;  %v1283_v31 = vld [vmem:[#allocation6 + $0x350] sm:$0xff]  ;;  %v1218_v32 = vld [vmem:[#allocation6 + $0x148] sm:$0xff] }
 0x3a1   :  { %1342 = vmatpush1.msra.mxu1 %v1183_v33  ;;  %1413 = vmatpush1.msra.mxu0 %v1247_v34  ;;  %v1282_v33 = vld [vmem:[#allocation6 + $0x348] sm:$0xff]  ;;  %v1217_v34 = vld [vmem:[#allocation6 + $0x140] sm:$0xff] }
 0x3a2   :  { %1343 = vmatprep.subr.mxu1 %v1182_v35  ;;  %1414 = vmatprep.subr.mxu0 %v1246_v36  ;;  %v1281_v35 = vld [vmem:[#allocation6 + $0x340] sm:$0xff]  ;;  %v1216_v36 = vld [vmem:[#allocation6 + $0x138] sm:$0xff] }
 0x3a3   :  { %1344 = vmatpush1.msra.mxu1 %v1181_v37  ;;  %1415 = vmatpush1.msra.mxu0 %v1245_v38  ;;  %v1280_v37 = vld [vmem:[#allocation6 + $0x338] sm:$0xff]  ;;  %v1215_v38 = vld [vmem:[#allocation6 + $0x130] sm:$0xff] }
 0x3a4   :  { %1345 = vmatprep.subr.mxu1 %v1180_v39  ;;  %1416 = vmatprep.subr.mxu0 %v1244_v40  ;;  %v1279_v39 = vld [vmem:[#allocation6 + $0x330] sm:$0xff]  ;;  %v1214_v40 = vld [vmem:[#allocation6 + $0x128] sm:$0xff] }
 0x3a5   :  { %1346 = vmatpush1.msra.mxu1 %v1179_v41  ;;  %1417 = vmatpush1.msra.mxu0 %v1243_v42  ;;  %v1278_v41 = vld [vmem:[#allocation6 + $0x328] sm:$0xff]  ;;  %v1213_v42 = vld [vmem:[#allocation6 + $0x120] sm:$0xff] }
 0x3a6   :  { %1347 = vmatprep.subr.mxu1 %v1178_v43  ;;  %1418 = vmatprep.subr.mxu0 %v1242_v44  ;;  %v1277_v43 = vld [vmem:[#allocation6 + $0x320] sm:$0xff]  ;;  %v1212_v44 = vld [vmem:[#allocation6 + $0x118] sm:$0xff] }
 0x3a7   :  { %1348 = vmatpush1.msra.mxu1 %v1177_v45  ;;  %1419 = vmatpush1.msra.mxu0 %v1241_v46  ;;  %v1276_v45 = vld [vmem:[#allocation6 + $0x318] sm:$0xff]  ;;  %v1211_v46 = vld [vmem:[#allocation6 + $0x110] sm:$0xff] }
 0x3a8   :  { %1349 = vmatprep.subr.mxu1 %v1240_v47  ;;  %1420 = vmatprep.subr.mxu0 %v1304_v48  ;;  %v1275_v47 = vld [vmem:[#allocation6 + $0x310] sm:$0xff]  ;;  %v1210_v48 = vld [vmem:[#allocation6 + $0x108] sm:$0xff] }
 0x3a9   :  { %1350 = vmatpush2.msra.mxu1 %v1239_v49  ;;  %1421 = vmatpush2.msra.mxu0 %v1303_v50  ;;  %v1274_v49 = vld [vmem:[#allocation6 + $0x308] sm:$0xff]  ;;  %v1209_v50 = vld [vmem:[#allocation6 + $0x100] sm:$0xff] }
 0x3aa   :  { %1351 = vmatprep.subr.mxu1 %v1238_v51  ;;  %1422 = vmatprep.subr.mxu0 %v1302_v52  ;;  %v1273_v51 = vld [vmem:[#allocation6 + $0x300] sm:$0xff] }
 0x3ab   :  { %1352 = vmatpush2.msra.mxu1 %v1237_v53  ;;  %1423 = vmatpush2.msra.mxu0 %v1301_v54  ;;  %v1009_v52 = vld [vmem:[%s2241_s10] sm:$0xf] }
 0x3ac   :  { %1353 = vmatprep.subr.mxu1 %v1236_v55  ;;  %1424 = vmatprep.subr.mxu0 %v1300_v56  ;;  %v1014_v53 = vrot.slane %v1009_v52, %v2069_v6  ;;  %v1022_v54 = vrot.slane %v1009_v52, %v226_v5  ;;  %v1018_v55 = vrot.slane %v1009_v52, %v2075_v8 }
 0x3ad   :  { %1354 = vmatpush2.msra.mxu1 %v1235_v57  ;;  %1425 = vmatpush2.msra.mxu0 %v1299_v58  ;;  %v1026_v56 = vrot.slane %v1009_v52, %v230_v9  ;;  %v1310_v5 = vrot.slane %v1305_v4, %v2069_v6  ;;  %v1314_v9 = vrot.slane %v1305_v4, %v2075_v8 }
 0x3ae   :  { %1355 = vmatprep.subr.mxu1 %v1234_v59  ;;  %1426 = vmatprep.subr.mxu0 %v1298_v60 }
 0x3af   :  { %1356 = vmatpush2.msra.mxu1 %v1233_v61  ;;  %1427 = vmatpush2.msra.mxu0 %v1297_v62 }
 0x3b0   :  { %1357 = vmatprep.subr.mxu1 %v1232_v63  ;;  %1428 = vmatprep.subr.mxu0 %v1296_v0 }
 0x3b1   :  { %1358 = vmatpush2.msra.mxu1 %v1231_v1  ;;  %1429 = vmatpush2.msra.mxu0 %v1295_v2 }
 0x3b2   :  { %1359 = vmatprep.subr.mxu1 %v1230_v3  ;;  %1430 = vmatprep.subr.mxu0 %v1294_v7 }
 0x3b3   :  { %1360 = vmatpush2.msra.mxu1 %v1229_v10  ;;  %1431 = vmatpush2.msra.mxu0 %v1293_v11 }
 0x3b4   :  { %1361 = vmatprep.subr.mxu1 %v1228_v12  ;;  %1432 = vmatprep.subr.mxu0 %v1292_v13 }
 0x3b5   :  { %1362 = vmatpush2.msra.mxu1 %v1227_v14  ;;  %1433 = vmatpush2.msra.mxu0 %v1291_v15 }
 0x3b6   :  { %1363 = vmatprep.subr.mxu1 %v1226_v16  ;;  %1434 = vmatprep.subr.mxu0 %v1290_v17 }
 0x3b7   :  { %1364 = vmatpush2.msra.mxu1 %v1225_v18  ;;  %1435 = vmatpush2.msra.mxu0 %v1289_v19 }
 0x3b8   :  { %1365 = vmatprep.subr.mxu1 %v1224_v20  ;;  %1436 = vmatprep.subr.mxu0 %v1288_v21 }
 0x3b9   :  { %1366 = vmatpush2.msra.mxu1 %v1223_v22  ;;  %1437 = vmatpush2.msra.mxu0 %v1287_v23 }
 0x3ba   :  { %1367 = vmatprep.subr.mxu1 %v1222_v24  ;;  %1438 = vmatprep.subr.mxu0 %v1286_v25 }
 0x3bb   :  { %1368 = vmatpush2.msra.mxu1 %v1221_v26  ;;  %1439 = vmatpush2.msra.mxu0 %v1285_v27 }
 0x3bc   :  { %1369 = vmatprep.subr.mxu1 %v1220_v28  ;;  %1440 = vmatprep.subr.mxu0 %v1284_v29 }
 0x3bd   :  { %1370 = vmatpush2.msra.mxu1 %v1219_v30  ;;  %1441 = vmatpush2.msra.mxu0 %v1283_v31 }
 0x3be   :  { %1371 = vmatprep.subr.mxu1 %v1218_v32  ;;  %1442 = vmatprep.subr.mxu0 %v1282_v33 }
 0x3bf   :  { %1372 = vmatpush2.msra.mxu1 %v1217_v34  ;;  %1443 = vmatpush2.msra.mxu0 %v1281_v35 }
 0x3c0   :  { %1373 = vmatprep.subr.mxu1 %v1216_v36  ;;  %1444 = vmatprep.subr.mxu0 %v1280_v37 }
 0x3c1   :  { %1374 = vmatpush2.msra.mxu1 %v1215_v38  ;;  %1445 = vmatpush2.msra.mxu0 %v1279_v39 }
 0x3c2   :  { %1375 = vmatprep.subr.mxu1 %v1214_v40  ;;  %1446 = vmatprep.subr.mxu0 %v1278_v41 }
 0x3c3   :  { %1376 = vmatpush2.msra.mxu1 %v1213_v42  ;;  %1447 = vmatpush2.msra.mxu0 %v1277_v43 }
 0x3c4   :  { %1377 = vmatprep.subr.mxu1 %v1212_v44  ;;  %1448 = vmatprep.subr.mxu0 %v1276_v45 }
 0x3c5   :  { %1378 = vmatpush2.msra.mxu1 %v1211_v46  ;;  %1449 = vmatpush2.msra.mxu0 %v1275_v47 }
 0x3c6   :  { %1379 = vmatprep.subr.mxu1 %v1210_v48  ;;  %1450 = vmatprep.subr.mxu0 %v1274_v49 }
 0x3c7   :  { %1380 = vmatpush2.msra.mxu1 %v1209_v50  ;;  %1451 = vmatpush2.msra.mxu0 %v1273_v51 }
 0x448   :  { %v1097_v57 = vpop.f32.mrf.mxu1  ;;  %v1168_v58 = vpop.f32.mrf.mxu0 }
 0x449   :  { %v1098_v59 = vadd.f32 %v1097_v57, %v1014_v53  ;;  %v1169_v60 = vadd.f32 %v1168_v58, %v1022_v54 }
 0x44a   :  { %v1099_v61 = vpop.f32.mrf.mxu1  ;;  %v1170_v62 = vpop.f32.mrf.mxu0 }
 0x44b   :  { %v1100_v63 = vadd.f32 %v1099_v61, %v1018_v55  ;;  %v1171_v0 = vadd.f32 %v1170_v62, %v1026_v56  ;;  %v1173_v3 = vmax.f32 %v1098_v59, 0.0  ;;  %v1175_v7 = vmax.f32 %v1169_v60, 0.0 }
 0x44d   :  { %v1174_v1 = vmax.f32 %v1100_v63, 0.0  ;;  %v1176_v2 = vmax.f32 %v1171_v0, 0.0 }
 0x44f   :  { %1381 = vmatprep.mubr.f32.mxu1 %v1174_v1  ;;  %1452 = vmatprep.mubr.f32.mxu0 %v1176_v2 }
 0x450   :  { %1382 = vmatmul.mubr.f32.vlgmr.msra.gmra.mxu1 %v1173_v3  ;;  %1453 = vmatmul.mubr.f32.vlgmr.msra.gmra.mxu0 %v1175_v7 }
 0x510   :  { %v1383_v10 = vpop.f32.mrf.mxu1  ;;  %v1454_v11 = vpop.f32.mrf.mxu0 }
 0x511   :  { %v1384_v12 = vadd.f32 %v1383_v10, %v1310_v5 }
 0x512   :  { %v1385_v13 = vpop.f32.mrf.mxu1  ;;  %v1456_v15 = vpop.f32.mrf.mxu0 }
 0x513   :  { %v1386_v14 = vadd.f32 %v1385_v13, %v1314_v9  ;;  %v1455_v16 = vadd.f32 %v1454_v11, %v1384_v12 }
 0x515   :  { %v1457_v17 = vadd.f32 %v1456_v15, %v1386_v14 }
 0x517   :  { %v1461_v18 = vcombine.low %v1455_v16, %v1457_v17 }
 0x519   :  { %1480 = vst.sshfl [vmem:[%s2244_s13] sm:$0x33 pattern:$0x76325410] %v1461_v18 }
 0x51a   :  { %1475 = vsyncpa [#allocation3], 1 }
 0x51b   :  { %1476 = vsyncpa [#allocation5], 1 }

</bundles_post_ra>
